<compile_context>
chip_gen: v7x
topology: tpu7x:2x2x1
jax: 0.10.0
libtpu: 0.0.40
codegen_flags: <defaults>
</compile_context>

<pallas_src>
import math

import jax
import jax.numpy as jnp
from jax.experimental import pallas as pl
from jax.experimental.pallas import tpu as pltpu


def _kernel(x_ref, b_ref, o_ref):
    # x_ref: (tm, C+1) f32, b_ref: (C+1, tn) f32 (2*pi and pi/2 phase folded in)
    # o_ref: (tm, tn) — first M columns are sin(proj), last M are cos(proj).
    proj = jnp.dot(
        x_ref[...],
        b_ref[...],
        preferred_element_type=jnp.float32,
        precision=jax.lax.Precision.HIGHEST,
    )
    o_ref[...] = jnp.sin(proj).astype(o_ref.dtype)


def _vmem_budget_bytes():
    """Generation-aware VMEM budget for tile selection."""
    try:
        cap = pltpu.get_tpu_info().vmem_capacity_bytes
    except Exception:
        cap = 128 << 20
    # ~half of per-core VMEM, capped: v5e/v6e (128 MiB) -> 48 MiB, v7x (64 MiB) -> 32 MiB.
    return min(cap // 2, 48 << 20), cap


def _choose_tiles(N, C_aug, M2, budget):
    # Column tile: keep lane-dense output; only tile columns for large 2M.
    tn = M2
    if (M2 % 128 == 0) and M2 > 1024:
        for cand in (1024, 896, 768, 640, 512, 384, 256, 128):
            if M2 % cand == 0:
                tn = cand
                break
    # Row tile: double-buffered x block + out block plus ~2x (tm, tn) f32
    # in-kernel intermediates (proj, sin result).
    bytes_per_row = 4 * (2 * C_aug + 4 * tn)
    tm = max(128, (budget // bytes_per_row) // 128 * 128)
    n_up = ((N + 127) // 128) * 128
    tm = min(tm, n_up)
    # Give both v7x TensorCores work: >= 2 row steps whenever there are
    # >= 256 (padded) rows.  No effect on v5e/v6e (single TC).
    if n_up >= 256:
        tm = min(tm, max(128, (n_up // 2) // 128 * 128))
    return tm, tn


def gaussian_fourier_feature_transform(x, B, *, tm=None, tn=None):
    """x: (H, W, C) float32; B: (C, M) float32 -> (H, W, 2*M) float32."""
    H, W, C = x.shape
    Cb, M = B.shape
    assert Cb == C
    N = H * W
    M2 = 2 * M
    C_aug = C + 1

    x2d = x.reshape(N, C).astype(jnp.float32)
    # Constant-1 column so the pi/2 phase shift is applied by the MXU for free.
    x_aug = jnp.concatenate([x2d, jnp.ones((N, 1), jnp.float32)], axis=1)

    # Fold 2*pi into B; duplicate B along columns and add a phase bias row so
    # out[:, :M] = sin(proj) and out[:, M:] = sin(proj + pi/2) = cos(proj).
    two_pi_b = (2.0 * math.pi) * B.astype(jnp.float32)
    phase = jnp.concatenate(
        [jnp.zeros((1, M), jnp.float32),
         jnp.full((1, M), 0.5 * math.pi, jnp.float32)],
        axis=1,
    )
    b_aug = jnp.concatenate(
        [jnp.concatenate([two_pi_b, two_pi_b], axis=1), phase], axis=0
    )  # (C+1, 2M)

    budget, cap = _vmem_budget_bytes()
    auto_tm, auto_tn = _choose_tiles(N, C_aug, M2, budget)
    if tm is None:
        tm = auto_tm
    if tn is None:
        tn = auto_tn

    bytes_per_row = 4 * (2 * C_aug + 4 * tn)
    vmem_limit = min(int(cap * 0.9), max(tm * bytes_per_row + (8 << 20), 32 << 20))

    grid = (pl.cdiv(N, tm), pl.cdiv(M2, tn))

    out2d = pl.pallas_call(
        _kernel,
        out_shape=jax.ShapeDtypeStruct((N, M2), jnp.float32),
        grid_spec=pltpu.PrefetchScalarGridSpec(
            num_scalar_prefetch=0,
            grid=grid,
            in_specs=[
                pl.BlockSpec((tm, C_aug), lambda i, j: (i, 0)),  # x rows tile
                pl.BlockSpec((C_aug, tn), lambda i, j: (0, j)),  # B column tile
            ],
            out_specs=pl.BlockSpec((tm, tn), lambda i, j: (i, j)),
        ),
        compiler_params=pltpu.CompilerParams(
            dimension_semantics=("parallel", "parallel"),
            vmem_limit_bytes=vmem_limit,
        ),
        cost_estimate=pl.CostEstimate(
            flops=2 * N * C_aug * M2,
            transcendentals=N * M2,
            bytes_accessed=4 * (N * C_aug + C_aug * M2 + N * M2),
        ),
    )(x_aug, b_aug)

    # Pure reshape (no slice, no copy) back to (H, W, 2*M).
    return out2d.reshape(H, W, M2)


if __name__ == "__main__":
    # Small shapes consistent with the module: (H, W, C) -> (H, W, 2*mapping_size).
    H, W = 16, 16
    in_features = 4
    mapping_size = 64  # 2*mapping_size = 128 -> lane-dense output
    scale = 5.0

    key = jax.random.PRNGKey(0)
    kx, kb = jax.random.split(key)
    x = jax.random.normal(kx, (H, W, in_features), dtype=jnp.float32)
    # Deterministic "torch.randn * scale" equivalent for the B matrix.
    B = jax.random.normal(kb, (in_features, mapping_size), dtype=jnp.float32) * scale

    out = gaussian_fourier_feature_transform(x, B)
    out = jax.block_until_ready(out)

    # Reference check (plain JAX, f32-accurate matmul).
    proj = 2.0 * math.pi * jnp.matmul(x, B, precision=jax.lax.Precision.HIGHEST)
    ref = jnp.concatenate([jnp.sin(proj), jnp.cos(proj)], axis=-1)
    assert out.shape == (H, W, 2 * mapping_size)
    err = float(jnp.max(jnp.abs(out - ref)))
    assert err < 1e-3, err

    print("KERNEL_OK")
</pallas_src>

<mosaic_0001>
module attributes {stable_mosaic.version = 11 : i64} {
  func.func @_kernel(%arg0: i32, %arg1: i32, %arg2: memref<128x5xf32, #tpu.memory_space<vmem>>, %arg3: memref<5x128xf32, #tpu.memory_space<vmem>>, %arg4: memref<128x128xf32, #tpu.memory_space<vmem>>) attributes {dimension_semantics = [#tpu.dimension_semantics<parallel>, #tpu.dimension_semantics<parallel>], iteration_bounds = array<i64: 2, 1>, scalar_prefetch = 0 : i64, scratch_operands = 0 : i64, tpu.core_type = #tpu.core_type<tc>, window_params = [{transform_indices = @transform_0, window_bounds = array<i64: 128, 5>}, {transform_indices = @transform_1, window_bounds = array<i64: 5, 128>}, {transform_indices = @transform_2, window_bounds = array<i64: 128, 128>}]} {
    %c0 = arith.constant 0 : index
    %c0_0 = arith.constant 0 : index
    %0 = vector.load %arg2[%c0, %c0_0] : memref<128x5xf32, #tpu.memory_space<vmem>>, vector<128x5xf32>
    %c0_1 = arith.constant 0 : index
    %c0_2 = arith.constant 0 : index
    %1 = vector.load %arg3[%c0_1, %c0_2] : memref<5x128xf32, #tpu.memory_space<vmem>>, vector<5x128xf32>
    %cst = arith.constant dense<0.000000e+00> : vector<128x128xf32>
    %2 = tpu.matmul %0, %1, %cst {dimension_numbers = #tpu.dot_dimension_numbers<[1], [0], [0], [1], [0, 0, 1, 1], [], []>, precision = #tpu.contract_precision<fp32>} : vector<128x5xf32>, vector<5x128xf32>, vector<128x128xf32> -> vector<128x128xf32>
    %3 = math.sin %2 : vector<128x128xf32>
    %c0_3 = arith.constant 0 : index
    %c0_4 = arith.constant 0 : index
    %4 = vector.load %arg4[%c0_3, %c0_4] : memref<128x128xf32, #tpu.memory_space<vmem>>, vector<128x128xf32>
    tpu.vector_store %arg4[%c0_3, %c0_4], %3 {strides = array<i32>} : memref<128x128xf32, #tpu.memory_space<vmem>>, vector<128x128xf32>,
    return
  }
  func.func @transform_0(%arg0: i32, %arg1: i32) -> (i32, i32) {
    %c0_i32 = arith.constant 0 : i32
    %c0_i32_0 = arith.constant 0 : i32
    return %arg0, %c0_i32 : i32, i32
  }
  func.func @transform_1(%arg0: i32, %arg1: i32) -> (i32, i32) {
    %c0_i32 = arith.constant 0 : i32
    %c0_i32_0 = arith.constant 0 : i32
    return %c0_i32, %arg1 : i32, i32
  }
  func.func @transform_2(%arg0: i32, %arg1: i32) -> (i32, i32) {
    %c0_i32 = arith.constant 0 : i32
    return %arg0, %arg1 : i32, i32
  }
}

</mosaic_0001>

<bundles_post_ra>
// kernel: tpu_custom_call.1
= control target key start
LH: loop header
LB: loop body
LE: loop exit
PB: predicated region body
PF: predicated region fallthrough
CT: control target
= control target key end

     0   :  { %7 = vsyncpa [#allocation3], 0  ;;  %s5474_s0 = inlined_call_operand.vmem [shape: f32[256,5], index: 0, kind: input, shape index: {}]   ;;  %s5475_s1 = inlined_call_operand.vmem [shape: f32[5,128], index: 1, kind: input, shape index: {}]   ;;  %s5476_s2 = inlined_call_operand.hbm [shape: f32[256,128], index: 2, kind: output, shape index: {}]  }
   0x1   :  { %9 = vsyncpa [#allocation3 + $0x1], 0  ;;  %s3831_s9 = smov 0   ;;  %s3833_s10 = smov 0  }
   0x2   :  { %s3835_s11 = smov 0   ;;  %s3837_s12 = smov 0  }
   0x3   :  { %s3839_s13 = smov 0   ;;  %s3841_s14 = smov 0  }
   0x4 LB: > { %s3119_s15 = sadd.s32 4294967295, %s3805_s14   ;;  %s3120_s16 = sadd.s32 4294967294, %s3805_s14   ;;  %s3805_s14 = sphi %s3841_s14, %s15_s14   ;;  %s3801_s13 = sphi %s3839_s13, %s5511_s13   ;;  %s3797_s12 = sphi %s3837_s12, %s5510_s12   ;;  %s3793_s11 = sphi %s3835_s11, %s5509_s11   ;;  %s3789_s10 = sphi %s3833_s10, %s5508_s10   ;;  %s3785_s9 = sphi %s3831_s9, %s5507_s9  }
   0x5   : > { %s27_s17 = sadd.s32 1, %s3801_s13  ;;  %s88_s18 = sadd.s32 1, %s3793_s11 }
   0x6   : > { %p29_p0 = scmp.ge.s32.totalorder %s27_s17, 2  ;;  %p98_p1 = scmp.ne.s32.totalorder %s3793_s11, %s3789_s10 }
   0x7   : > { %p99_p2 = scmp.eq.s32.totalorder %s3119_s15, 1  ;;  %p104_p3 = scmp.ne.s32.totalorder %s3789_s10, %s3785_s9 }
   0x8   : > { %s5513_s17 = smov (%p29_p0, %s27_s17), 0  ;;  %p105_p5 = scmp.eq.s32.totalorder %s3120_s16, 1 }
   0x9   : > { %p3871_p4 = por %p99_p2, %p98_p1  ;;  %s83_s20 = ssub.s32 %s3801_s13, %s5513_s17 }
   0xa   : > { %p3124_p6 = scmp.ge.s32.totalorder %s3805_s14, 1  ;;  %p86_p7 = scmp.eq.s32.totalorder %s83_s20, 0 }
   0xb   : > { %p3878_p8 = por %p105_p5, %p104_p3  ;;  %p139_p9 = scmp.lt.s32.totalorder %s3805_s14, 3 }
   0xc   : > { %s3884_s22 = scalar_select %p86_p7, %s3793_s11, %s88_s18  }
   0xd   : > { %p140_p10 = pnand %p3124_p6, %p139_p9 }
   0xe   : > { %v192_v0 = vld [vmem:[%s5475_s1] sm:$0x1f] (!%p140_p10)  ;;  %vm242_vm0 = vcmask (!%p140_p10), 1044480   ;;  %s3126_s25 = sshll.u32 (!%p140_p10), %s3797_s12, 4  ;;  %vm193_vm1 = vcmask (!%p140_p10), 39936   ;;  %s162_s30 = sand.u32 (!%p140_p10), 1, %s3789_s10  }
   0xf   : > { %143 = sbr.rel (%p140_p10) target bundleno = 762 (0x2fa), region = 28  ;;  %v244_v1 = vsel (!%p140_p10), %vm242_vm0, %v192_v0, 0  ;;  %p166_p11 = scmp.lt.s32.totalorder (!%p140_p10), %s3126_s25, 31 }
  0x10   : > { %v3890_v2 = vand.u32 (!%p140_p10), 4294901760, %v244_v1  ;;  %s3125_s3 = sshll.u32 (!%p140_p10), %s162_s30, 7  ;;  %s3197_s5 = sshll.u32 (!%p140_p10), %s3797_s12, 11 }
  0x11   : > { %s4440_s4 = scalar_lea.vmem (!%p140_p10), [#allocation2], %s3125_s3  ;;  %s5420_s15 = scalar_lea.hbm (!%p140_p10), %s5476_s2, %s3197_s5 }
  0x12   : > { %3378 = vmatprep.subr.mxu0 (!%p140_p10), %v3890_v2  ;;  %3300 = vmatprep.subr.mxu1 (!%p140_p10), %v3890_v2  ;;  %v3895_v3 = vsub.f32 (!%p140_p10), %v244_v1, %v3890_v2  ;;  %s3032_s6 = sshll.u32 (!%p140_p10), %s4440_s4, 4  ;;  %s5428_s12 = scalar_lea.sflag (!%p140_p10), [#allocation3], %s162_s30  ;;  %s5422_s6 = int_to_ptr.vmem [resolvable:$true] %s3032_s6 }
  0x13   : > { %3379 = vmatpush3.msra.mxu0 (!%p140_p10), %v3890_v2  ;;  %3301 = vmatpush3.msra.mxu1 (!%p140_p10), %v3890_v2  ;;  %s3727_s16 = scalar_lea.vmem (!%p140_p10), %s5422_s6, 2048  ;;  %s3813_s18 = smov (!%p140_p10), [#allocation2]  }
  0x14   : > { %v475_v4 = vand.u32 (!%p140_p10), 4294901760, %v3895_v3  ;;  %p3728_p12 = scmp.ne.s32.totalorder (!%p140_p10), %s5422_s6, %s3727_s16  ;;  %s3731_s20 = sshll.u32 (!%p140_p10), %s3813_s18, 4  ;;  %s3732_s20 = int_to_ptr.vmem [resolvable:$false] %s3731_s20 }
  0x15   : > { %s3733_s23 = scalar_lea.vmem (!%p140_p10), %s3732_s20, 4096  ;;  %p3734_p1 = scmp.lt.s32.totalorder (!%p140_p10), %s5422_s6, %s3732_s20 }
  0x16   : > { %s5515_s25 = smov (!%p166_p11, %s3126_s25), 31  ;;  %v476_v10 = vsub.f32 %v3895_v3, %v475_v4  ;;  %3404 = vmatprep.subr.mxu0 %v475_v4  ;;  %p3729_p13 = pnand %p3728_p12, %p3871_p4 }
  0x17   : > { %s3127_s26 = sshll.u32 %s5515_s25, 3  ;;  %p3735_p2 = scmp.lt.s32.totalorder %s3733_s23, %s3727_s16 }
  0x18   : > { %s3902_s29 = scalar_lea.vmem %s5474_s0, %s3127_s26  ;;  %v477_v21 = vand.u32 4294901760, %v476_v10  ;;  %p3730_p0 = pneg %p3729_p13 }
  0x19   : > { %v176_v5 = vld [vmem:[%s3902_s29] sm:$0xff]  ;;  %v177_v6 = vld [vmem:[%s3902_s29 + $0x8] sm:$0xff]  ;;  %v178_v7 = vld [vmem:[%s3902_s29 + $0x10] sm:$0xff]  ;;  %p3736_p3 = por %p3735_p2, %p3734_p1 }
  0x1a   : > { %v195_v8 = vsel %vm193_vm1, %v176_v5, 0  ;;  %v198_v9 = vsel %vm193_vm1, %v177_v6, 0  ;;  %v201_v11 = vsel %vm193_vm1, %v178_v7, 0  ;;  %v179_v12 = vld [vmem:[%s3902_s29 + $0x18] sm:$0xff]  ;;  %v180_v13 = vld [vmem:[%s3902_s29 + $0x20] sm:$0xff]  ;;  %v181_v14 = vld [vmem:[%s3902_s29 + $0x28] sm:$0xff]  ;;  %3326 = vmatprep.subr.mxu1 %v477_v21 }
  0x1b   : > { %v3915_v15 = vand.u32 4294901760, %v195_v8  ;;  %v3917_v16 = vand.u32 4294901760, %v198_v9  ;;  %v3919_v17 = vand.u32 4294901760, %v201_v11  ;;  %v204_v18 = vsel %vm193_vm1, %v179_v12, 0  ;;  %v182_v19 = vld [vmem:[%s3902_s29 + $0x30] sm:$0xff]  ;;  %v183_v20 = vld [vmem:[%s3902_s29 + $0x38] sm:$0xff]  ;;  %p3737_p5 = pnand %p3736_p3, %p3730_p0 }
  0x1c   : > { %v3924_v22 = vand.u32 4294901760, %v204_v18  ;;  %v207_v23 = vsel %vm193_vm1, %v180_v13, 0  ;;  %v210_v24 = vsel %vm193_vm1, %v181_v14, 0  ;;  %v213_v31 = vsel %vm193_vm1, %v182_v19, 0  ;;  %v184_v49 = vld [vmem:[%s3902_s29 + $0x40] sm:$0xff]  ;;  %v185_v50 = vld [vmem:[%s3902_s29 + $0x48] sm:$0xff] }
  0x1d   : > { %v3929_v25 = vsub.f32 %v195_v8, %v3915_v15  ;;  %v3932_v26 = vsub.f32 %v198_v9, %v3917_v16  ;;  %v3935_v27 = vsub.f32 %v201_v11, %v3919_v17  ;;  %v3937_v28 = vand.u32 4294901760, %v207_v23  ;;  %v186_v51 = vld [vmem:[%s3902_s29 + $0x50] sm:$0xff]  ;;  %v187_v59 = vld [vmem:[%s3902_s29 + $0x58] sm:$0xff]  ;;  %v188_v60 = vld [vmem:[%s3902_s29 + $0x60] sm:$0xff] }
  0x1e   : > { %v3940_v29 = vsub.f32 %v204_v18, %v3924_v22  ;;  %v3942_v30 = vand.u32 4294901760, %v210_v24  ;;  %v216_v32 = vsel %vm193_vm1, %v183_v20, 0  ;;  %v3956_v39 = vand.u32 4294901760, %v213_v31  ;;  %v189_v7 = vld [vmem:[%s3902_s29 + $0x68] sm:$0xff]  ;;  %v190_v12 = vld [vmem:[%s3902_s29 + $0x70] sm:$0xff] }
  0x1f   : > { %v314_v33 = vand.u32 4294901760, %v3929_v25  ;;  %v324_v34 = vand.u32 4294901760, %v3932_v26  ;;  %v334_v35 = vand.u32 4294901760, %v3935_v27  ;;  %v3950_v36 = vsub.f32 %v207_v23, %v3937_v28 }
  0x20   : > { %v344_v37 = vand.u32 4294901760, %v3940_v29  ;;  %v3954_v38 = vsub.f32 %v210_v24, %v3942_v30  ;;  %v3958_v40 = vand.u32 4294901760, %v216_v32  ;;  %v3967_v47 = vsub.f32 %v213_v31, %v3956_v39  ;;  %v191_v31 = vld [vmem:[%s3902_s29 + $0x78] sm:$0xff] }
  0x21   : > { %3380 = vmatprep.mubr.f32.mxu0 %v314_v33  ;;  %v315_v41 = vsub.f32 %v3929_v25, %v314_v33  ;;  %v325_v42 = vsub.f32 %v3932_v26, %v324_v34  ;;  %v335_v43 = vsub.f32 %v3935_v27, %v334_v35  ;;  %v354_v44 = vand.u32 4294901760, %v3950_v36 }
  0x22   : > { %3381 = vmatmul.mubr.f32.vlgmr.msra.gmra.mrb[0].mxu0 %v324_v34  ;;  %v345_v45 = vsub.f32 %v3940_v29, %v344_v37  ;;  %v364_v46 = vand.u32 4294901760, %v3954_v38  ;;  %v3970_v48 = vsub.f32 %v216_v32, %v3958_v40  ;;  %v374_v56 = vand.u32 4294901760, %v3967_v47 }
  0x23   : > { %v316_v52 = vand.u32 4294901760, %v315_v41  ;;  %3383 = vmatprep.mubr.f32.mxu0 %v334_v35  ;;  %v326_v53 = vand.u32 4294901760, %v325_v42  ;;  %3405 = vmatpush3.msra.mxu0 %v475_v4  ;;  %v336_v54 = vand.u32 4294901760, %v335_v43  ;;  %v355_v55 = vsub.f32 %v3950_v36, %v354_v44 }
  0x24   : > { %v365_v57 = vsub.f32 %v3954_v38, %v364_v46  ;;  %v384_v58 = vand.u32 4294901760, %v3970_v48  ;;  %3430 = vmatprep.subr.mxu0 %v3890_v2  ;;  %v346_v61 = vand.u32 4294901760, %v345_v45  ;;  %v219_v62 = vsel %vm193_vm1, %v184_v49, 0 }
  0x25   : > { %3302 = vmatprep.mubr.f32.mxu1 %v316_v52  ;;  %v222_v63 = vsel %vm193_vm1, %v185_v50, 0  ;;  %v225_v0 = vsel %vm193_vm1, %v186_v51, 0  ;;  %v356_v1 = vand.u32 4294901760, %v355_v55  ;;  %v375_v5 = vsub.f32 %v3967_v47, %v374_v56 }
  0x26   : > { %3303 = vmatmul.mubr.f32.vlgmr.msra.gmra.mrb[0].mxu1 %v326_v53  ;;  %3384 = vmatmul.mubr.f32.gmra.mrb[2].mxu0 %v344_v37  ;;  %v366_v4 = vand.u32 4294901760, %v365_v57  ;;  %v3986_v6 = vand.u32 4294901760, %v219_v62  ;;  %v3989_v8 = vand.u32 4294901760, %v222_v63  ;;  %v3991_v9 = vand.u32 4294901760, %v225_v0 }
  0x27   : > { %3327 = vmatpush3.msra.mxu1 %v477_v21  ;;  %3305 = vmatprep.mubr.f32.mxu1 %v336_v54  ;;  %v228_v10 = vsel %vm193_vm1, %v187_v59, 0  ;;  %v231_v11 = vsel %vm193_vm1, %v188_v60, 0  ;;  %v376_v13 = vand.u32 4294901760, %v375_v5  ;;  %v385_v18 = vsub.f32 %v3970_v48, %v384_v58 }
  0x28   : > { %3386 = vmatprep.mubr.f32.mxu0 %v354_v44  ;;  %v3997_v14 = vsub.f32 %v219_v62, %v3986_v6  ;;  %v4000_v19 = vand.u32 4294901760, %v228_v10  ;;  %3352 = vmatprep.subr.mxu1 %v3895_v3  ;;  %v4004_v20 = vsub.f32 %v222_v63, %v3989_v8  ;;  %v4007_v21 = vsub.f32 %v225_v0, %v3991_v9 }
  0x29   : > { %v4009_v23 = vand.u32 4294901760, %v231_v11  ;;  %v234_v24 = vsel %vm193_vm1, %v189_v7, 0  ;;  %v237_v35 = vsel %vm193_vm1, %v190_v12, 0  ;;  %v240_v45 = vsel %vm193_vm1, %v191_v31, 0 }
  0x2a   : > { %3306 = vmatmul.mubr.f32.gmra.mrb[2].mxu1 %v346_v61  ;;  %3387 = vmatmul.mubr.f32.gmra.mrb[4].mxu0 %v364_v46  ;;  %v394_v32 = vand.u32 4294901760, %v3997_v14  ;;  %v4015_v33 = vsub.f32 %v228_v10, %v4000_v19  ;;  %v4017_v34 = vand.u32 4294901760, %v234_v24  ;;  %v404_v37 = vand.u32 4294901760, %v4004_v20 }
  0x2b   : > { %3308 = vmatprep.mubr.f32.mxu1 %v356_v1  ;;  %3389 = vmatprep.mubr.f32.mxu0 %v374_v56  ;;  %v414_v41 = vand.u32 4294901760, %v4007_v21  ;;  %v4023_v42 = vsub.f32 %v231_v11, %v4009_v23  ;;  %v4025_v43 = vand.u32 4294901760, %v237_v35  ;;  %v386_v46 = vand.u32 4294901760, %v385_v18 }
  0x2c   : > { %v395_v44 = vsub.f32 %v3997_v14, %v394_v32  ;;  %v405_v49 = vsub.f32 %v4004_v20, %v404_v37  ;;  %v424_v50 = vand.u32 4294901760, %v4015_v33  ;;  %v4032_v51 = vsub.f32 %v234_v24, %v4017_v34 }
  0x2d   : > { %v4034_v52 = vand.u32 4294901760, %v240_v45  ;;  %v415_v54 = vsub.f32 %v4007_v21, %v414_v41  ;;  %v434_v55 = vand.u32 4294901760, %v4023_v42  ;;  %v4039_v56 = vsub.f32 %v237_v35, %v4025_v43 }
  0x2e   : > { %3309 = vmatmul.mubr.f32.gmra.mrb[4].mxu1 %v366_v4  ;;  %3390 = vmatmul.mubr.f32.gmra.mrb[6].mxu0 %v384_v58  ;;  %v396_v53 = vand.u32 4294901760, %v395_v44  ;;  %v406_v57 = vand.u32 4294901760, %v405_v49  ;;  %v425_v58 = vsub.f32 %v4015_v33, %v424_v50  ;;  %v444_v59 = vand.u32 4294901760, %v4032_v51 }
  0x2f   : > { %3311 = vmatprep.mubr.f32.mxu1 %v376_v13  ;;  %3392 = vmatprep.mubr.f32.mxu0 %v394_v32  ;;  %v4044_v60 = vsub.f32 %v240_v45, %v4034_v52  ;;  %v416_v61 = vand.u32 4294901760, %v415_v54  ;;  %v435_v62 = vsub.f32 %v4023_v42, %v434_v55  ;;  %v454_v63 = vand.u32 4294901760, %v4039_v56 }
  0x30   : > { %v426_v0 = vand.u32 4294901760, %v425_v58  ;;  %v445_v1 = vsub.f32 %v4032_v51, %v444_v59 }
  0x31   : > { %v464_v4 = vand.u32 4294901760, %v4044_v60  ;;  %v436_v5 = vand.u32 4294901760, %v435_v62  ;;  %v455_v7 = vsub.f32 %v4039_v56, %v454_v63 }
  0x32   : > { %3312 = vmatmul.mubr.f32.gmra.mrb[6].mxu1 %v386_v46  ;;  %3393 = vmatmul.mubr.f32.gmra.mrb[8].mxu0 %v404_v37  ;;  %v446_v10 = vand.u32 4294901760, %v445_v1  ;;  %v3810_v1 = vmov 2102212464  }
  0x33   : > { %3314 = vmatprep.mubr.f32.mxu1 %v396_v53  ;;  %3395 = vmatprep.mubr.f32.mxu0 %v414_v41  ;;  %v465_v11 = vsub.f32 %v4044_v60, %v464_v4  ;;  %v456_v12 = vand.u32 4294901760, %v455_v7 }
  0x35   : > { %v466_v13 = vand.u32 4294901760, %v465_v11 }
  0x36   : > { %3315 = vmatmul.mubr.f32.gmra.mrb[8].mxu1 %v406_v57  ;;  %3396 = vmatmul.mubr.f32.gmra.mrb[10].mxu0 %v424_v50  ;;  %v3807_v57 = vmov 683565275  }
  0x37   : > { %3317 = vmatprep.mubr.f32.mxu1 %v416_v61  ;;  %3398 = vmatprep.mubr.f32.mxu0 %v434_v55  ;;  %v3808_v61 = vmov 2475754826  }
  0x3a   : > { %3318 = vmatmul.mubr.f32.gmra.mrb[10].mxu1 %v426_v0  ;;  %3399 = vmatmul.mubr.f32.gmra.mrb[12].mxu0 %v444_v59 }
  0x3b   : > { %3320 = vmatprep.mubr.f32.mxu1 %v436_v5  ;;  %3401 = vmatprep.mubr.f32.mxu0 %v454_v63  ;;  %v3809_v63 = vmov 2131351028   ;;  %v3811_v5 = vmov 920167782  }
  0x3e   : > { %3321 = vmatmul.mubr.f32.gmra.mrb[12].mxu1 %v446_v10  ;;  %3402 = vmatmul.mubr.f32.gmra.mrb[14].mxu0 %v464_v4 }
  0x3f   : > { %3323 = vmatprep.mubr.f32.mxu1 %v456_v12  ;;  %3406 = vmatprep.mubr.f32.mxu0 %v3915_v15 }
  0x42   : > { %3324 = vmatmul.mubr.f32.gmra.mrb[14].mxu1 %v466_v13  ;;  %3407 = vmatmul.mubr.f32.vlgmr.msra.gmra.mrb[0].mxu0 %v3917_v16 }
  0x43   : > { %3328 = vmatprep.mubr.f32.mxu1 %v3915_v15  ;;  %3409 = vmatprep.mubr.f32.mxu0 %v3919_v17 }
  0x44   : > { %3431 = vmatpush3.msra.mxu0 %v3890_v2 }
  0x46   : > { %3329 = vmatmul.mubr.f32.vlgmr.msra.gmra.mrb[0].mxu1 %v3917_v16  ;;  %3410 = vmatmul.mubr.f32.gmra.mrb[2].mxu0 %v3924_v22 }
  0x47   : > { %3353 = vmatpush3.msra.mxu1 %v3895_v3  ;;  %3331 = vmatprep.mubr.f32.mxu1 %v3919_v17 }
  0x48   : > { %3412 = vmatprep.mubr.f32.mxu0 %v3937_v28 }
  0x4a   : > { %3332 = vmatmul.mubr.f32.gmra.mrb[2].mxu1 %v3924_v22  ;;  %3413 = vmatmul.mubr.f32.gmra.mrb[4].mxu0 %v3942_v30 }
  0x4b   : > { %3334 = vmatprep.mubr.f32.mxu1 %v3937_v28  ;;  %3415 = vmatprep.mubr.f32.mxu0 %v3956_v39 }
  0x4e   : > { %3335 = vmatmul.mubr.f32.gmra.mrb[4].mxu1 %v3942_v30  ;;  %3416 = vmatmul.mubr.f32.gmra.mrb[6].mxu0 %v3958_v40 }
  0x4f   : > { %3337 = vmatprep.mubr.f32.mxu1 %v3956_v39  ;;  %3418 = vmatprep.mubr.f32.mxu0 %v3986_v6 }
  0x52   : > { %3338 = vmatmul.mubr.f32.gmra.mrb[6].mxu1 %v3958_v40  ;;  %3419 = vmatmul.mubr.f32.gmra.mrb[8].mxu0 %v3989_v8 }
  0x53   : > { %3340 = vmatprep.mubr.f32.mxu1 %v3986_v6  ;;  %3421 = vmatprep.mubr.f32.mxu0 %v3991_v9 }
  0x56   : > { %3341 = vmatmul.mubr.f32.gmra.mrb[8].mxu1 %v3989_v8  ;;  %3422 = vmatmul.mubr.f32.gmra.mrb[10].mxu0 %v4000_v19 }
  0x57   : > { %3343 = vmatprep.mubr.f32.mxu1 %v3991_v9  ;;  %3424 = vmatprep.mubr.f32.mxu0 %v4009_v23 }
  0x5a   : > { %3344 = vmatmul.mubr.f32.gmra.mrb[10].mxu1 %v4000_v19  ;;  %3425 = vmatmul.mubr.f32.gmra.mrb[12].mxu0 %v4017_v34 }
  0x5b   : > { %3346 = vmatprep.mubr.f32.mxu1 %v4009_v23  ;;  %3427 = vmatprep.mubr.f32.mxu0 %v4025_v43 }
  0x5e   : > { %3347 = vmatmul.mubr.f32.gmra.mrb[12].mxu1 %v4017_v34  ;;  %3428 = vmatmul.mubr.f32.gmra.mrb[14].mxu0 %v4034_v52 }
  0x5f   : > { %3349 = vmatprep.mubr.f32.mxu1 %v4025_v43  ;;  %3432 = vmatprep.mubr.f32.mxu0 %v3915_v15 }
  0x62   : > { %3350 = vmatmul.mubr.f32.gmra.mrb[14].mxu1 %v4034_v52  ;;  %3433 = vmatmul.mubr.f32.vlgmr.msra.gmra.mrb[0].mxu0 %v3917_v16 }
  0x63   : > { %3354 = vmatprep.mubr.f32.mxu1 %v3929_v25  ;;  %3435 = vmatprep.mubr.f32.mxu0 %v3919_v17 }
  0x66   : > { %3355 = vmatmul.mubr.f32.vlgmr.msra.gmra.mrb[0].mxu1 %v3932_v26  ;;  %3436 = vmatmul.mubr.f32.gmra.mrb[2].mxu0 %v3924_v22 }
  0x67   : > { %3357 = vmatprep.mubr.f32.mxu1 %v3935_v27  ;;  %3438 = vmatprep.mubr.f32.mxu0 %v3937_v28 }
  0x6a   : > { %3358 = vmatmul.mubr.f32.gmra.mrb[2].mxu1 %v3940_v29  ;;  %3439 = vmatmul.mubr.f32.gmra.mrb[4].mxu0 %v3942_v30 }
  0x6b   : > { %3360 = vmatprep.mubr.f32.mxu1 %v3950_v36  ;;  %3441 = vmatprep.mubr.f32.mxu0 %v3956_v39 }
  0x6e   : > { %3361 = vmatmul.mubr.f32.gmra.mrb[4].mxu1 %v3954_v38  ;;  %3442 = vmatmul.mubr.f32.gmra.mrb[6].mxu0 %v3958_v40 }
  0x6f   : > { %3363 = vmatprep.mubr.f32.mxu1 %v3967_v47  ;;  %3444 = vmatprep.mubr.f32.mxu0 %v3986_v6 }
  0x72   : > { %3364 = vmatmul.mubr.f32.gmra.mrb[6].mxu1 %v3970_v48  ;;  %3445 = vmatmul.mubr.f32.gmra.mrb[8].mxu0 %v3989_v8 }
  0x73   : > { %3366 = vmatprep.mubr.f32.mxu1 %v3997_v14  ;;  %3447 = vmatprep.mubr.f32.mxu0 %v3991_v9 }
  0x76   : > { %3367 = vmatmul.mubr.f32.gmra.mrb[8].mxu1 %v4004_v20  ;;  %3448 = vmatmul.mubr.f32.gmra.mrb[10].mxu0 %v4000_v19 }
  0x77   : > { %3369 = vmatprep.mubr.f32.mxu1 %v4007_v21  ;;  %3450 = vmatprep.mubr.f32.mxu0 %v4009_v23 }
  0x7a   : > { %3370 = vmatmul.mubr.f32.gmra.mrb[10].mxu1 %v4015_v33  ;;  %3451 = vmatmul.mubr.f32.gmra.mrb[12].mxu0 %v4017_v34 }
  0x7b   : > { %3372 = vmatprep.mubr.f32.mxu1 %v4023_v42  ;;  %3453 = vmatprep.mubr.f32.mxu0 %v4025_v43 }
  0x7e   : > { %3373 = vmatmul.mubr.f32.gmra.mrb[12].mxu1 %v4032_v51  ;;  %3454 = vmatmul.mubr.f32.gmra.mrb[14].mxu0 %v4034_v52 }
  0x7f   : > { %3375 = vmatprep.mubr.f32.mxu1 %v4039_v56 }
  0x82   : > { %3376 = vmatmul.mubr.f32.gmra.mrb[14].mxu1 %v4044_v60 }
 0x135   : > { %v3434_v2 = vpop.f32.mrb[0].mxu0 }
 0x136   : > { %v1243_v3 = vpop.f32.mrb[1].mxu0 }
 0x139   : > { %v3356_v15 = vpop.f32.mrb[0].mxu1  ;;  %v3437_v16 = vpop.f32.mrb[2].mxu0 }
 0x13a   : > { %v4118_v17 = vadd.f32 %v3434_v2, %v3356_v15  ;;  %v708_v22 = vpop.f32.mrb[1].mxu1  ;;  %v1255_v25 = vpop.f32.mrb[3].mxu0 }
 0x13b   : > { %v4120_v26 = vadd.f32 %v1243_v3, %v708_v22  ;;  %v3812_v3 = vmov 1326507024  }
 0x13c   : > { %v1441_v27 = vand.u32 2147483647, %v4118_v17  ;;  %v1444_v28 = vand.u32 2139095040, %v4118_v17  ;;  %vm1443_vm15 = vcmp.lt.s32.totalorder %v4118_v17, 0 }
 0x13d   : > { %v1337_v29 = vand.u32 2147483647, %v4120_v26  ;;  %v1340_v30 = vand.u32 2139095040, %v4120_v26  ;;  %v3359_v36 = vpop.f32.mrb[2].mxu1  ;;  %v4126_v38 = vpop.f32.mrb[4].mxu0  ;;  %vm1339_vm1 = vcmp.lt.s32.totalorder %v4120_v26, 0 }
 0x13e   : > { %v1445_v39 = vshrl.u32 %v1444_v28, 23  ;;  %v1448_v40 = vand.u32 8388607, %v1441_v27  ;;  %v4130_v47 = vadd.f32 %v3437_v16, %v3359_v36  ;;  %v722_v48 = vpop.f32.mrb[3].mxu1  ;;  %v4136_v14 = vpop.f32.mrb[5].mxu0 }
 0x13f   : > { %v1341_v6 = vshrl.u32 %v1340_v30, 23  ;;  %v1344_v8 = vand.u32 8388607, %v1337_v29  ;;  %v4134_v9 = vadd.f32 %v1255_v25, %v722_v48  ;;  %vm4271_vm0 = vcmp.le.f32.partialorder %v1441_v27, 0.7853982 }
 0x140   : > { %v3132_v18 = vadd.s32 4294967169, %v1445_v39  ;;  %v1652_v20 = vand.u32 2139095040, %v4130_v47  ;;  %v1449_v24 = vor.u32 8388608, %v1448_v40  ;;  %v1649_v34 = vand.u32 2147483647, %v4130_v47 }
 0x141   : > { %v3128_v19 = vadd.s32 4294967169, %v1341_v6  ;;  %v4139_v21 = vpop.f32.mrb[4].mxu1  ;;  %v4141_v23 = vpop.f32.mrb[6].mxu0  ;;  %v1345_v32 = vor.u32 8388608, %v1344_v8 }
 0x142   : > { %v1451_v31 = vadd.s32 1, %v3132_v18  ;;  %v1653_v35 = vshrl.u32 %v1652_v20, 23  ;;  %v4144_v37 = vpop.f32.mrb[5].mxu1  ;;  %v4146_v41 = vpop.f32.mrb[7].mxu0  ;;  %v4154_v52 = vshll.u32 %v1449_v24, 8 }
 0x143   : > { %v1347_v33 = vadd.s32 1, %v3128_v19  ;;  %v4158_v54 = vshll.u32 %v1345_v32, 8  ;;  %v4162_v55 = vand.u32 8388607, %v1649_v34 }
 0x144   : > { %vm1452_vm2 = vcmp.gt.s32.totalorder %v1451_v31, 0  ;;  %v3140_v43 = vadd.s32 4294967169, %v1653_v35 }
 0x145   : > { %v1453_v42 = vsel %vm1452_vm2, %v1451_v31, 0  ;;  %vm1348_vm3 = vcmp.gt.s32.totalorder %v1347_v33, 0  ;;  %v4148_v44 = vpop.f32.mrb[6].mxu1  ;;  %v4150_v50 = vpop.f32.mrb[8].mxu0 }
 0x146   : > { %v1454_v45 = vshrl.u32 %v1453_v42, 5  ;;  %v1455_v46 = vand.u32 31, %v1453_v42  ;;  %v1349_v49 = vsel %vm1348_vm3, %v1347_v33, 0  ;;  %v4152_v51 = vpop.f32.mrb[7].mxu1  ;;  %v4165_v60 = vadd.s32 1, %v3140_v43 }
 0x147   : > { %v4156_v53 = vshrl.u32 %v1349_v49, 5  ;;  %v1351_v59 = vand.u32 31, %v1349_v49 }
 0x148   : > { %v1456_v56 = vsub.s32 32, %v1455_v46  ;;  %v1458_v58 = vshll.u32 %v3807_v57, %v1455_v46  ;;  %v1461_v62 = vshll.u32 %v3808_v61, %v1455_v46  ;;  %v1464_v0 = vshll.u32 %v3809_v63, %v1455_v46 }
 0x149   : > { %v1467_v4 = vshll.u32 %v3810_v1, %v1455_v46  ;;  %v1470_v7 = vshll.u32 %v3811_v5, %v1455_v46  ;;  %vm1473_vm4 = vcmp.lt.s32.totalorder %v1454_v45, 1  ;;  %vm1474_vm5 = vcmp.lt.s32.totalorder %v1454_v45, 2 }
 0x14a   : > { %v1459_v10 = vshrl.u32 %v3808_v61, %v1456_v56  ;;  %v1462_v11 = vshrl.u32 %v3809_v63, %v1456_v56  ;;  %v1465_v12 = vshrl.u32 %v3810_v1, %v1456_v56  ;;  %v1457_v13 = vshrl.u32 %v3807_v57, %v1456_v56 }
 0x14b   : > { %v1468_v2 = vshrl.u32 %v3811_v5, %v1456_v56  ;;  %v1471_v15 = vshrl.u32 %v3812_v3, %v1456_v56  ;;  %v1352_v28 = vsub.s32 32, %v1351_v59  ;;  %vm1475_vm6 = vcmp.lt.s32.totalorder %v1454_v45, 3 }
 0x14c   : > { %v1460_v16 = vor.u32 %v1459_v10, %v1458_v58  ;;  %v1463_v22 = vor.u32 %v1462_v11, %v1461_v62  ;;  %v1466_v25 = vor.u32 %v1465_v12, %v1464_v0  ;;  %vm1476_vm7 = vcmp.lt.s32.totalorder %v1454_v45, 4 }
 0x14d   : > { %v1469_v30 = vor.u32 %v1468_v2, %v1467_v4  ;;  %v1472_v36 = vor.u32 %v1471_v15, %v1470_v7  ;;  %v1354_v20 = vshll.u32 %v3807_v57, %v1351_v59  ;;  %v1355_v32 = vshrl.u32 %v3808_v61, %v1352_v28 }
 0x14e   : > { %v1477_v39 = vsel %vm1473_vm4, %v1457_v13, %v1460_v16  ;;  %v1478_v40 = vsel %vm1476_vm7, %v1466_v25, 2102212464  ;;  %v1481_v48 = vsel %vm1473_vm4, %v1460_v16, %v1463_v22  ;;  %v1485_v6 = vsel %vm1473_vm4, %v1463_v22, %v1466_v25 }
 0x14f   : > { %v1479_v8 = vsel %vm1475_vm6, %v1463_v22, %v1478_v40  ;;  %v1482_v18 = vsel %vm1476_vm7, %v1469_v30, 920167782  ;;  %v1486_v19 = vsel %vm1476_vm7, %v1472_v36, 1326507024  ;;  %v1357_v33 = vshll.u32 %v3808_v61, %v1351_v59  ;;  %v4210_v40 = vpop.f32.mrb[9].mxu0 }
 0x150   : > { %v1483_v24 = vsel %vm1475_vm6, %v1466_v25, %v1482_v18  ;;  %v1487_v31 = vsel %vm1475_vm6, %v1469_v30, %v1486_v19  ;;  %v1480_v35 = vsel %vm1474_vm5, %v1477_v39, %v1479_v8  ;;  %v1358_v46 = vshrl.u32 %v3809_v63, %v1352_v28 }
 0x151   : > { %v1484_v42 = vsel %vm1474_vm5, %v1481_v48, %v1483_v24  ;;  %v1488_v43 = vsel %vm1474_vm5, %v1485_v6, %v1487_v31  ;;  %v1356_v0 = vor.u32 %v1355_v32, %v1354_v20  ;;  %v1360_v7 = vshll.u32 %v3809_v63, %v1351_v59 }
 0x152   : > { %v4188_v49 = vmul.u32.u64.low %v4154_v52, %v1488_v43  ;;  %v4189_v56 = vmul.u32.u64.high %v4154_v52, %v1488_v43, %v4188_v49  ;;  %v4192_v58 = vmul.u32.u64.low %v4154_v52, %v1484_v42  ;;  %v4193_v62 = vmul.u32.u64.high %v4154_v52, %v1484_v42, %v4192_v58  ;;  %v4222_v42 = vpop.f32.mrb[8].mxu1 }
 0x153   : > { %v1359_v4 = vor.u32 %v1358_v46, %v1357_v33  ;;  %v1361_v10 = vshrl.u32 %v3810_v1, %v1352_v28  ;;  %v1353_v11 = vshrl.u32 %v3807_v57, %v1352_v28  ;;  %v1363_v45 = vshll.u32 %v3810_v1, %v1351_v59 }
 0x154   : > { %v1364_v12 = vshrl.u32 %v3811_v5, %v1352_v28  ;;  %v1367_v13 = vshrl.u32 %v3812_v3, %v1352_v28  ;;  %v1496_v2 = vmul.u32 %v4154_v52, %v1480_v35  ;;  %v1366_v16 = vshll.u32 %v3811_v5, %v1351_v59 }
 0x155   : > { %v1362_v15 = vor.u32 %v1361_v10, %v1360_v7  ;;  %vm1369_vm8 = vcmp.lt.s32.totalorder %v4156_v53, 1  ;;  %vm1498_vm9 = vc.u32 %v4189_v56, %v4192_v58  ;;  %v1499_v22 = vadd.s32 1, %v4193_v62 }
 0x156   : > { %v1365_v25 = vor.u32 %v1364_v12, %v1363_v45  ;;  %vm1370_vm10 = vcmp.lt.s32.totalorder %v4156_v53, 2  ;;  %v1368_v30 = vor.u32 %v1367_v13, %v1366_v16  ;;  %vm1371_vm11 = vcmp.lt.s32.totalorder %v4156_v53, 3 }
 0x157   : > { %vm1372_vm12 = vcmp.lt.s32.totalorder %v4156_v53, 4  ;;  %v1377_v28 = vsel %vm1369_vm8, %v1356_v0, %v1359_v4  ;;  %v1500_v52 = vsel %vm1498_vm9, %v1499_v22, %v4193_v62  ;;  %v1381_v59 = vsel %vm1369_vm8, %v1359_v4, %v1362_v15 }
 0x158   : > { %v1374_v36 = vsel %vm1372_vm12, %v1362_v15, 2102212464  ;;  %v1378_v39 = vsel %vm1372_vm12, %v1365_v25, 920167782  ;;  %v1501_v48 = vadd.s32 %v1500_v52, %v1496_v2  ;;  %v1373_v6 = vsel %vm1369_vm8, %v1353_v11, %v1356_v0 }
 0x159   : > { %v1379_v8 = vsel %vm1371_vm11, %v1362_v15, %v1378_v39  ;;  %v1382_v18 = vsel %vm1372_vm12, %v1368_v30, 1326507024  ;;  %v1375_v19 = vsel %vm1371_vm11, %v1359_v4, %v1374_v36  ;;  %vm1660_vm13 = vcmp.gt.s32.totalorder %v4165_v60, 0 }
 0x15a   : > { %v1380_v20 = vsel %vm1370_vm10, %v1377_v28, %v1379_v8  ;;  %v1383_v24 = vsel %vm1371_vm11, %v1365_v25, %v1382_v18  ;;  %v1502_v31 = vadd.s32 536870912, %v1501_v48  ;;  %v1661_v49 = vsel %vm1660_vm13, %v4165_v60, 0 }
 0x15b   : > { %v1384_v32 = vsel %vm1370_vm10, %v1381_v59, %v1383_v24  ;;  %v4218_v33 = vmul.u32.u64.low %v4158_v54, %v1380_v20  ;;  %v4219_v35 = vmul.u32.u64.high %v4158_v54, %v1380_v20, %v4218_v33  ;;  %v1376_v0 = vsel %vm1370_vm10, %v1373_v6, %v1375_v19 }
 0x15c   : > { %v4225_v43 = vmul.u32.u64.low %v4158_v54, %v1384_v32  ;;  %v4226_v46 = vmul.u32.u64.high %v4158_v54, %v1384_v32, %v4225_v43  ;;  %v1503_v62 = vshrl.u32 %v1502_v31, 30  ;;  %v1663_v4 = vand.u32 31, %v1661_v49 }
 0x15d   : > { %v1548_v7 = vand.u32 2139095040, %v4134_v9  ;;  %v4234_v10 = vadd.f32 %v4126_v38, %v4139_v21  ;;  %v4238_v11 = vadd.f32 %v4136_v14, %v4144_v37  ;;  %v1395_v12 = vadd.s32 1, %v4219_v35 }
 0x15e   : > { %v1504_v45 = vshll.u32 %v1503_v62, 30  ;;  %v1657_v60 = vor.u32 8388608, %v4162_v55  ;;  %v1392_v13 = vmul.u32 %v4158_v54, %v1376_v0  ;;  %vm1394_vm14 = vc.u32 %v4226_v46, %v4218_v33 }
 0x15f   : > { %v1664_v53 = vsub.s32 32, %v1663_v4  ;;  %v1396_v38 = vsel %vm1394_vm14, %v1395_v12, %v4219_v35  ;;  %v1549_v21 = vshrl.u32 %v1548_v7, 23  ;;  %v1545_v37 = vand.u32 2147483647, %v4134_v9 }
 0x160   : > { %v4245_v2 = vsub.s32 %v1501_v48, %v1504_v45  ;;  %v1397_v14 = vadd.s32 %v1396_v38, %v1392_v13  ;;  %v1497_v15 = vadd.s32 %v4192_v58, %v4189_v56  ;;  %v4252_v16 = vshrl.u32 %v1661_v49, 5 }
 0x161   : > { %v4254_v54 = vshll.u32 %v1657_v60, 8  ;;  %v1527_v22 = vsub.s32 4, %v1503_v62  ;;  %v1667_v30 = vshrl.u32 %v3808_v61, %v1664_v53  ;;  %v1670_v28 = vshrl.u32 %v3809_v63, %v1664_v53 }
 0x162   : > { %v1507_v55 = vsub.s32 0, %v4245_v2  ;;  %v1398_v25 = vadd.s32 536870912, %v1397_v14  ;;  %v1673_v36 = vshrl.u32 %v3810_v1, %v1664_v53  ;;  %v1676_v39 = vshrl.u32 %v3811_v5, %v1664_v53 }
 0x163   : > { %v4261_v59 = vadd.s32 4294967169, %v1549_v21  ;;  %v1666_v58 = vshll.u32 %v3807_v57, %v1663_v4  ;;  %v1669_v48 = vshll.u32 %v3808_v61, %v1663_v4  ;;  %v4267_v6 = vand.u32 8388607, %v1545_v37 }
 0x164   : > { %v3133_v52 = vmin.u32 %v1507_v55, %v4245_v2  ;;  %v1399_v56 = vshrl.u32 %v1398_v25, 30  ;;  %v1672_v19 = vshll.u32 %v3809_v63, %v1663_v4  ;;  %v1675_v20 = vshll.u32 %v3810_v1, %v1663_v4 }
 0x165   : > { %v1679_v24 = vshrl.u32 %v3812_v3, %v1664_v53  ;;  %v1528_v31 = vsel %vm1443_vm15, %v1527_v22, %v1503_v62  ;;  %v1668_v35 = vor.u32 %v1667_v30, %v1666_v58  ;;  %v1671_v43 = vor.u32 %v1670_v28, %v1669_v48 }
 0x166   : > { %v1509_v18 = vclz %v3133_v52  ;;  %v1400_v32 = vshll.u32 %v1399_v56, 30  ;;  %v1674_v27 = vor.u32 %v1673_v36, %v1672_v19  ;;  %v1677_v0 = vor.u32 %v1676_v39, %v1675_v20 }
 0x167   : > { %v1678_v7 = vshll.u32 %v3811_v5, %v1663_v4  ;;  %v1423_v12 = vsub.s32 4, %v1399_v56  ;;  %v1665_v60 = vshrl.u32 %v3807_v57, %v1664_v53  ;;  %vm1681_vm2 = vcmp.lt.s32.totalorder %v4252_v16, 1 }
 0x168   : > { %v3134_v49 = vadd.s32 4294967294, %v1509_v18  ;;  %v4282_v45 = vsub.s32 %v1397_v14, %v1400_v32  ;;  %vm1682_vm4 = vcmp.lt.s32.totalorder %v4252_v16, 2  ;;  %vm1683_vm5 = vcmp.lt.s32.totalorder %v4252_v16, 3 }
 0x169   : > { %v1680_v13 = vor.u32 %v1679_v24, %v1678_v7  ;;  %vm4290_vm6 = vcmp.le.f32.partialorder %v1337_v29, 0.7853982  ;;  %vm1684_vm7 = vcmp.lt.s32.totalorder %v4252_v16, 4  ;;  %v1689_v53 = vsel %vm1681_vm2, %v1668_v35, %v1671_v43 }
 0x16a   : > { %vm3135_vm3 = vcmp.lt.s32.totalorder %v3134_v49, 0  ;;  %v1403_v4 = vsub.s32 0, %v4282_v45  ;;  %v1686_v55 = vsel %vm1684_vm7, %v1674_v27, 2102212464  ;;  %v1690_v22 = vsel %vm1684_vm7, %v1677_v0, 920167782 }
 0x16b   : > { %v1512_v62 = vsel %vm3135_vm3, 0, %v3134_v49  ;;  %v1691_v29 = vsel %vm1683_vm5, %v1674_v27, %v1690_v22  ;;  %v1693_v28 = vsel %vm1681_vm2, %v1671_v43, %v1674_v27  ;;  %v1694_v58 = vsel %vm1684_vm7, %v1680_v13, 1326507024 }
 0x16c   : > { %v1513_v21 = vsub.s32 32, %v1512_v62  ;;  %v1517_v14 = vsub.s32 4294967266, %v1512_v62  ;;  %v1514_v25 = vshll.u32 %v4245_v2, %v1512_v62  ;;  %v3129_v30 = vmin.u32 %v1403_v4, %v4282_v45 }
 0x16d   : > { %v1692_v39 = vsel %vm1682_vm4, %v1689_v53, %v1691_v29  ;;  %v1530_v48 = vsel %vm4271_vm0, 0, %v1528_v31  ;;  %v1685_v2 = vsel %vm1681_vm2, %v1665_v60, %v1668_v35  ;;  %v1687_v19 = vsel %vm1683_vm5, %v1671_v43, %v1686_v55 }
 0x16e   : > { %v1515_v52 = vshrl.u32 %v1497_v15, %v1513_v21  ;;  %v1518_v36 = vadd.s32 127, %v1517_v14  ;;  %v1405_v18 = vclz %v3129_v30  ;;  %v1424_v15 = vsel %vm1339_vm1, %v1423_v12, %v1399_v56 }
 0x16f   : > { %v1695_v32 = vsel %vm1683_vm5, %v1677_v0, %v1694_v58  ;;  %v4319_v31 = vmul.u32.u64.low %v4254_v54, %v1692_v39  ;;  %v4320_v7 = vmul.u32.u64.high %v4254_v54, %v1692_v39, %v4319_v31  ;;  %v1688_v43 = vsel %vm1682_vm4, %v1685_v2, %v1687_v19 }
 0x170   : > { %v1516_v20 = vor.u32 %v1515_v52, %v1514_v25  ;;  %v1519_v24 = vshll.u32 %v1518_v36, 23  ;;  %v3130_v49 = vadd.s32 4294967294, %v1405_v18  ;;  %v1696_v27 = vsel %vm1682_vm4, %v1693_v28, %v1695_v32  ;;  %v4336_v25 = vpop.f32.mrb[10].mxu0 }
 0x171   : > { %v4326_v60 = vmul.u32.u64.low %v4254_v54, %v1696_v27  ;;  %v4327_v13 = vmul.u32.u64.high %v4254_v54, %v1696_v27, %v4326_v60  ;;  %v1534_v56 = vadd.s32 3, %v1530_v48  ;;  %v1393_v0 = vadd.s32 %v4218_v33, %v4226_v46  ;;  %v4341_v46 = vpop.f32.mrb[9].mxu1 }
 0x172   : > { %v1520_v35 = vor.u32 4788187, %v1519_v24  ;;  %vm3131_vm8 = vcmp.lt.s32.totalorder %v3130_v49, 0  ;;  %v1555_v12 = vadd.s32 1, %v4261_v59  ;;  %v1523_v4 = vcvt.s32.f32 %v1516_v20 }
 0x173   : > { %v1408_v53 = vsel %vm3131_vm8, 0, %v3130_v49  ;;  %v1426_v21 = vsel %vm4290_vm6, 0, %v1424_v15  ;;  %v1704_v55 = vmul.u32 %v4254_v54, %v1688_v43  ;;  %v1707_v22 = vadd.s32 1, %v4320_v7 }
 0x174   : > { %v1521_v62 = vand.u32 2147483647, %v1520_v35  ;;  %v1409_v14 = vsub.s32 32, %v1408_v53  ;;  %v1413_v16 = vsub.s32 4294967266, %v1408_v53  ;;  %v1410_v33 = vshll.u32 %v4282_v45, %v1408_v53 }
 0x175   : > { %vm1706_vm9 = vc.u32 %v4327_v13, %v4319_v31  ;;  %vm1556_vm10 = vcmp.gt.s32.totalorder %v1555_v12, 0  ;;  %v1430_v54 = vadd.s32 3, %v1426_v21  ;;  %v4349_v24 = vand.u32 3, %v1534_v56 }
 0x176   : > { %v1524_v30 = vmul.f32 %v1523_v4, %v1521_v62  ;;  %v1411_v59 = vshrl.u32 %v1393_v0, %v1409_v14  ;;  %v1414_v29 = vadd.s32 127, %v1413_v16  ;;  %v1708_v28 = vsel %vm1706_vm9, %v1707_v22, %v4320_v7 }
 0x177   : > { %v1557_v52 = vsel %vm1556_vm10, %v1555_v12, 0  ;;  %v1709_v39 = vadd.s32 %v1708_v28, %v1704_v55  ;;  %vm1651_vm11 = vcmp.lt.s32.totalorder %v4130_v47, 0  ;;  %v4352_v32 = vand.u32 3, %v1430_v54 }
 0x178   : > { %v1525_v36 = vxor.u32 2147483648, %v1524_v30  ;;  %v1559_v58 = vand.u32 31, %v1557_v52  ;;  %v1412_v48 = vor.u32 %v1411_v59, %v1410_v33  ;;  %v1415_v18 = vshll.u32 %v1414_v29, 23 }
 0x179   : > { %v1710_v2 = vadd.s32 536870912, %v1709_v39  ;;  %v1553_v27 = vor.u32 8388608, %v4267_v6  ;;  %v1860_v43 = vand.u32 2139095040, %v4234_v10  ;;  %vm4358_vm12 = vcmp.le.f32.partialorder %v1649_v34, 0.7853982 }
 0x17a   : > { %v1526_v45 = vsel %vm1443_vm15, %v1525_v36, %v1524_v30  ;;  %v1560_v19 = vsub.s32 32, %v1559_v58  ;;  %v1416_v15 = vor.u32 4788187, %v1415_v18  ;;  %v1419_v35 = vcvt.s32.f32 %v1412_v48 }
 0x17b   : > { %v1529_v20 = vsel %vm4271_vm0, %v4118_v17, %v1526_v45  ;;  %v1711_v49 = vshrl.u32 %v1710_v2, 30  ;;  %v4362_v56 = vshrl.u32 %v1557_v52, 5  ;;  %v1571_v4 = vshll.u32 %v3810_v1, %v1559_v58 }
 0x17c   : > { %3663 = vcosq.f32 %v1529_v20  ;;  %v1417_v7 = vand.u32 2147483647, %v1416_v15  ;;  %v1563_v0 = vshrl.u32 %v3808_v61, %v1560_v19  ;;  %v1566_v12 = vshrl.u32 %v3809_v63, %v1560_v19 }
 0x17d   : > { %3665 = vsinq.f32 %v1529_v20  ;;  %v1712_v60 = vshll.u32 %v1711_v49, 30  ;;  %v1569_v6 = vshrl.u32 %v3810_v1, %v1560_v19  ;;  %v1572_v53 = vshrl.u32 %v3811_v5, %v1560_v19 }
 0x17e   : > { %v1420_v62 = vmul.f32 %v1419_v35, %v1417_v7  ;;  %vm1540_vm13 = vcmp.eq.s32.totalorder %v4349_v24, 2  ;;  %v1735_v21 = vsub.s32 4, %v1711_v49  ;;  %v1562_v14 = vshll.u32 %v3807_v57, %v1559_v58 }
 0x17f   : > { %v4370_v34 = vsub.s32 %v1709_v39, %v1712_v60  ;;  %v1565_v16 = vshll.u32 %v3808_v61, %v1559_v58  ;;  %vm1537_vm14 = vcmp.eq.s32.totalorder %v4349_v24, 0  ;;  %v1568_v22 = vshll.u32 %v3809_v63, %v1559_v58 }
 0x180   : > { %v1421_v55 = vxor.u32 2147483648, %v1420_v62  ;;  %v1573_v30 = vor.u32 %v1572_v53, %v1571_v4  ;;  %v1575_v33 = vshrl.u32 %v3812_v3, %v1560_v19  ;;  %vm1536_vm15 = vcmp.lt.s32.totalorder %v4349_v24, 2  ;;  %v4419_v53 = vpop.f32.mrb[11].mxu0 }
 0x181   : > { %v1705_v59 = vadd.s32 %v4319_v31, %v4327_v13  ;;  %v1715_v29 = vsub.s32 0, %v4370_v34  ;;  %v1564_v28 = vor.u32 %v1563_v0, %v1562_v14  ;;  %v1567_v52 = vor.u32 %v1566_v12, %v1565_v16 }
 0x182   : > { %vm1533_vm0 = vweird.f32 %v4118_v17  ;;  %v1422_v36 = vsel %vm1339_vm1, %v1421_v55, %v1420_v62  ;;  %v1570_v54 = vor.u32 %v1569_v6, %v1568_v22  ;;  %v1574_v39 = vshll.u32 %v3811_v5, %v1559_v58 }
 0x183   : > { %v4385_v48 = vshll.u32 %v1553_v27, 8  ;;  %v1425_v31 = vsel %vm4290_vm6, %v4120_v26, %v1422_v36  ;;  %v3141_v13 = vmin.u32 %v1715_v29, %v4370_v34  ;;  %v1736_v18 = vsel %vm1651_vm11, %v1735_v21, %v1711_v49 }
 0x184   : > { %vm1580_vm2 = vcmp.lt.s32.totalorder %v4362_v56, 4  ;;  %3667 = vcosq.f32 %v1425_v31  ;;  %v1576_v45 = vor.u32 %v1575_v33, %v1574_v39  ;;  %vm1577_vm1 = vcmp.lt.s32.totalorder %v4362_v56, 1  ;;  %v4438_v39 = vpop.f32.mrb[10].mxu1 }
 0x185   : > { %v1586_v58 = vsel %vm1580_vm2, %v1573_v30, 920167782  ;;  %3669 = vsinq.f32 %v1425_v31  ;;  %v1717_v20 = vclz %v3141_v13  ;;  %vm1579_vm3 = vcmp.lt.s32.totalorder %v4362_v56, 3 }
 0x186   : > { %v3664_v2 = vpop.eup %3663  ;;  %v1585_v38 = vsel %vm1577_vm1, %v1564_v28, %v1567_v52  ;;  %v1738_v27 = vsel %vm4358_vm12, 0, %v1736_v18  ;;  %v1561_v7 = vshrl.u32 %v3807_v57, %v1560_v19  ;;  %v1587_v35 = vsel %vm1579_vm3, %v1570_v54, %v1586_v58 }
 0x187   : > { %v3666_v15 = vpop.eup %3665  ;;  %v1541_v49 = vxor.u32 2147483648, %v3664_v2  ;;  %v3142_v0 = vadd.s32 4294967294, %v1717_v20  ;;  %vm1578_vm4 = vcmp.lt.s32.totalorder %v4362_v56, 2  ;;  %v1582_v12 = vsel %vm1580_vm2, %v1570_v54, 2102212464 }
 0x188   : > { %v1538_v60 = vxor.u32 2147483648, %v3666_v15  ;;  %v1588_v6 = vsel %vm1578_vm4, %v1585_v38, %v1587_v35  ;;  %v1589_v4 = vsel %vm1577_vm1, %v1567_v52, %v1570_v54  ;;  %v1590_v19 = vsel %vm1580_vm2, %v1576_v45, 1326507024 }
 0x189   : > { %v1542_v62 = vsel %vm1540_vm13, %v1541_v49, %v3666_v15  ;;  %vm3143_vm5 = vcmp.lt.s32.totalorder %v3142_v0, 0  ;;  %v1591_v14 = vsel %vm1579_vm3, %v1573_v30, %v1590_v19  ;;  %v1861_v16 = vshrl.u32 %v1860_v43, 23 }
 0x18a   : > { %v1539_v21 = vsel %vm1537_vm14, %v3664_v2, %v1538_v60  ;;  %v1720_v22 = vsel %vm3143_vm5, 0, %v3142_v0  ;;  %v1581_v33 = vsel %vm1577_vm1, %v1561_v7, %v1564_v28  ;;  %v1592_v29 = vsel %vm1578_vm4, %v1589_v4, %v1591_v14 }
 0x18b   : > { %v1543_v55 = vsel %vm1536_vm15, %v1539_v21, %v1542_v62  ;;  %vm1429_vm6 = vweird.f32 %v4120_v26  ;;  %v1721_v54 = vsub.s32 32, %v1720_v22  ;;  %v1725_v30 = vsub.s32 4294967266, %v1720_v22 }
 0x18c   : > { %v1544_v36 = vsel %vm1533_vm0, nan, %v1543_v55  ;;  %v1583_v43 = vsel %vm1579_vm3, %v1567_v52, %v1582_v12  ;;  %v4444_v24 = vmul.u32.u64.low %v4385_v48, %v1592_v29  ;;  %v4445_v28 = vmul.u32.u64.high %v4385_v48, %v1592_v29, %v4444_v24 }
 0x18d   : > { %3002 = vst [vmem:[%s4440_s4 + $0x8] sm:$0xff] %v1544_v36  ;;  %v4448_v17 = vmul.u32.u64.low %v4385_v48, %v1588_v6  ;;  %v4449_v31 = vmul.u32.u64.high %v4385_v48, %v1588_v6, %v4448_v17  ;;  %v1722_v13 = vshll.u32 %v4370_v34, %v1720_v22  ;;  %v1723_v18 = vshrl.u32 %v1705_v59, %v1721_v54 }
 0x18e   : > { %v1726_v45 = vadd.s32 127, %v1725_v30  ;;  %v3148_v52 = vadd.s32 4294967169, %v1861_v16  ;;  %v3668_v58 = vpop.eup %3667  ;;  %vm1432_vm7 = vcmp.lt.s32.totalorder %v4352_v32, 2  ;;  %vm1433_vm8 = vcmp.eq.s32.totalorder %v4352_v32, 0 }
 0x18f   : > { %vm1436_vm9 = vcmp.eq.s32.totalorder %v4352_v32, 2  ;;  %v1584_v2 = vsel %vm1578_vm4, %v1581_v33, %v1583_v43  ;;  %v3670_v20 = vpop.eup %3669  ;;  %v1437_v38 = vxor.u32 2147483648, %v3668_v58  ;;  %v1724_v15 = vor.u32 %v1723_v18, %v1722_v13 }
 0x190   : > { %v1727_v49 = vshll.u32 %v1726_v45, 23  ;;  %v1867_v7 = vadd.s32 1, %v3148_v52  ;;  %v1434_v35 = vxor.u32 2147483648, %v3670_v20  ;;  %v1742_v34 = vadd.s32 3, %v1738_v27 }
 0x191   : > { %vm1602_vm10 = vc.u32 %v4445_v28, %v4448_v17  ;;  %v1603_v59 = vadd.s32 1, %v4449_v31  ;;  %v1438_v60 = vsel %vm1436_vm9, %v1437_v38, %v3670_v20  ;;  %v1600_v12 = vmul.u32 %v4385_v48, %v1584_v2 }
 0x192   : > { %v1728_v0 = vor.u32 4788187, %v1727_v49  ;;  %vm1868_vm13 = vcmp.gt.s32.totalorder %v1867_v7, 0  ;;  %v1435_v56 = vsel %vm1433_vm8, %v3668_v58, %v1434_v35  ;;  %v1857_v6 = vand.u32 2147483647, %v4234_v10 }
 0x193   : > { %v1604_v62 = vsel %vm1602_vm10, %v1603_v59, %v4449_v31  ;;  %v1869_v4 = vsel %vm1868_vm13, %v1867_v7, 0  ;;  %v1439_v27 = vsel %vm1432_vm7, %v1435_v56, %v1438_v60  ;;  %v1731_v21 = vcvt.s32.f32 %v1724_v15 }
 0x194   : > { %v1729_v19 = vand.u32 2147483647, %v1728_v0  ;;  %v1605_v14 = vadd.s32 %v1604_v62, %v1600_v12  ;;  %v1440_v16 = vsel %vm1429_vm6, nan, %v1439_v27  ;;  %v1871_v55 = vand.u32 31, %v1869_v4 }
 0x195   : > { %3001 = vst [vmem:[%s4440_s4] sm:$0xff] %v1440_v16  ;;  %v4471_v22 = vand.u32 3, %v1742_v34  ;;  %v1864_v29 = vand.u32 8388607, %v1857_v6  ;;  %v1870_v36 = vshrl.u32 %v1869_v4, 5  ;;  %v1756_v32 = vand.u32 2139095040, %v4238_v11 }
 0x196   : > { %v1732_v48 = vmul.f32 %v1731_v21, %v1729_v19  ;;  %v1606_v33 = vadd.s32 536870912, %v1605_v14  ;;  %v1872_v54 = vsub.s32 32, %v1871_v55  ;;  %v1874_v24 = vshll.u32 %v3807_v57, %v1871_v55 }
 0x197   : > { %v1877_v26 = vshll.u32 %v3808_v61, %v1871_v55  ;;  %v1880_v18 = vshll.u32 %v3809_v63, %v1871_v55  ;;  %v1883_v2 = vshll.u32 %v3810_v1, %v1871_v55  ;;  %v1865_v34 = vor.u32 8388608, %v1864_v29 }
 0x198   : > { %v1733_v30 = vxor.u32 2147483648, %v1732_v48  ;;  %v4476_v43 = vshrl.u32 %v1606_v33, 30  ;;  %v1875_v31 = vshrl.u32 %v3808_v61, %v1872_v54  ;;  %v1878_v13 = vshrl.u32 %v3809_v63, %v1872_v54 }
 0x199   : > { %v1881_v45 = vshrl.u32 %v3810_v1, %v1872_v54  ;;  %v1884_v20 = vshrl.u32 %v3811_v5, %v1872_v54  ;;  %v1886_v60 = vshll.u32 %v3811_v5, %v1871_v55  ;;  %v1887_v0 = vshrl.u32 %v3812_v3, %v1872_v54 }
 0x19a   : > { %v1734_v52 = vsel %vm1651_vm11, %v1733_v30, %v1732_v48  ;;  %v1608_v58 = vshll.u32 %v4476_v43, 30  ;;  %v1876_v15 = vor.u32 %v1875_v31, %v1874_v24  ;;  %v1879_v49 = vor.u32 %v1878_v13, %v1877_v26 }
 0x19b   : > { %v1737_v38 = vsel %vm4358_vm12, %v4130_v47, %v1734_v52  ;;  %v1882_v7 = vor.u32 %v1881_v45, %v1880_v18  ;;  %v1885_v59 = vor.u32 %v1884_v20, %v1883_v2  ;;  %v1757_v12 = vshrl.u32 %v1756_v32, 23 }
 0x19c   : > { %3671 = vcosq.f32 %v1737_v38  ;;  %v4492_v35 = vsub.s32 %v1605_v14, %v1608_v58  ;;  %vm1547_vm11 = vcmp.lt.s32.totalorder %v4134_v9, 0  ;;  %vm1889_vm14 = vcmp.lt.s32.totalorder %v1870_v36, 1 }
 0x19d   : > { %3673 = vsinq.f32 %v1737_v38  ;;  %vm1891_vm12 = vcmp.lt.s32.totalorder %v1870_v36, 3  ;;  %vm1892_vm15 = vcmp.lt.s32.totalorder %v1870_v36, 4  ;;  %v1888_v8 = vor.u32 %v1887_v0, %v1886_v60 }
 0x19e   : > { %v1611_v56 = vsub.s32 0, %v4492_v35  ;;  %v1894_v62 = vsel %vm1892_vm15, %v1882_v7, 2102212464  ;;  %v1897_v4 = vsel %vm1889_vm14, %v1876_v15, %v1879_v49  ;;  %v1898_v27 = vsel %vm1892_vm15, %v1885_v59, 920167782 }
 0x19f   : > { %v1873_v21 = vshrl.u32 %v3807_v57, %v1872_v54  ;;  %vm1890_vm0 = vcmp.lt.s32.totalorder %v1870_v36, 2  ;;  %v1899_v14 = vsel %vm1891_vm12, %v1882_v7, %v1898_v27  ;;  %vm1745_vm2 = vcmp.eq.s32.totalorder %v4471_v22, 0  ;;  %v4540_v36 = vpop.f32.mrb[11].mxu1 }
 0x1a0   : > { %v3137_v19 = vmin.u32 %v1611_v56, %v4492_v35  ;;  %v1900_v16 = vsel %vm1890_vm0, %v1897_v4, %v1899_v14  ;;  %v1901_v55 = vsel %vm1889_vm14, %v1879_v49, %v1882_v7  ;;  %v1902_v48 = vsel %vm1892_vm15, %v1888_v8, 1326507024 }
 0x1a1   : > { %v1905_v33 = vshll.u32 %v1865_v34, 8  ;;  %vm1744_vm1 = vcmp.lt.s32.totalorder %v4471_v22, 2  ;;  %vm1748_vm3 = vcmp.eq.s32.totalorder %v4471_v22, 2  ;;  %v1893_v32 = vsel %vm1889_vm14, %v1873_v21, %v1876_v15  ;;  %v4532_v15 = vpop.f32.mrb[12].mxu0 }
 0x1a2   : > { %v1613_v29 = vclz %v3137_v19  ;;  %v1895_v54 = vsel %vm1891_vm12, %v1879_v49, %v1894_v62  ;;  %vm1741_vm4 = vweird.f32 %v4130_v47  ;;  %vm4512_vm5 = vcmp.le.f32.partialorder %v1545_v37, 0.7853982 }
 0x1a3   : > { %v1631_v24 = vsub.s32 4, %v4476_v43  ;;  %v1903_v26 = vsel %vm1891_vm12, %v1885_v59, %v1902_v48  ;;  %v4518_v31 = vmul.u32.u64.low %v1905_v33, %v1900_v16  ;;  %v4519_v13 = vmul.u32.u64.high %v1905_v33, %v1900_v16, %v4518_v31 }
 0x1a4   : > { %v3138_v18 = vadd.s32 4294967294, %v1613_v29  ;;  %v1904_v45 = vsel %vm1890_vm0, %v1901_v55, %v1903_v26  ;;  %v1753_v52 = vand.u32 2147483647, %v4238_v11  ;;  %v3144_v58 = vadd.s32 4294967169, %v1757_v12 }
 0x1a5   : > { %v1896_v2 = vsel %vm1890_vm0, %v1893_v32, %v1895_v54  ;;  %v4525_v37 = vmul.u32.u64.low %v1905_v33, %v1904_v45  ;;  %v4526_v20 = vmul.u32.u64.high %v1905_v33, %v1904_v45, %v4525_v37  ;;  %v4530_v38 = vadd.f32 %v4141_v23, %v4148_v44 }
 0x1a6   : > { %v3672_v49 = vpop.eup %3671  ;;  %v1601_v7 = vadd.s32 %v4448_v17, %v4445_v28  ;;  %vm3139_vm6 = vcmp.lt.s32.totalorder %v3138_v18, 0  ;;  %v1763_v34 = vadd.s32 1, %v3144_v58  ;;  %v4538_v59 = vadd.f32 %v4146_v41, %v4152_v51 }
 0x1a7   : > { %v3674_v60 = vpop.eup %3673  ;;  %v1749_v0 = vxor.u32 2147483648, %v3672_v49  ;;  %v1616_v12 = vsel %vm3139_vm6, 0, %v3138_v18  ;;  %v1632_v23 = vsel %vm1547_vm11, %v1631_v24, %v4476_v43  ;;  %v1915_v44 = vadd.s32 1, %v4519_v13 }
 0x1a8   : > { %v1746_v56 = vxor.u32 2147483648, %v3674_v60  ;;  %v1617_v8 = vsub.s32 32, %v1616_v12  ;;  %v1621_v28 = vsub.s32 4294967266, %v1616_v12  ;;  %v1912_v17 = vmul.u32 %v1905_v33, %v1896_v2 }
 0x1a9   : > { %v1750_v62 = vsel %vm1748_vm3, %v1749_v0, %v3674_v60  ;;  %v1618_v41 = vshll.u32 %v4492_v35, %v1616_v12  ;;  %vm1914_vm7 = vc.u32 %v4526_v20, %v4518_v31  ;;  %vm1764_vm8 = vcmp.gt.s32.totalorder %v1763_v34, 0 }
 0x1aa   : > { %v1747_v51 = vsel %vm1745_vm2, %v3672_v49, %v1746_v56  ;;  %v1619_v43 = vshrl.u32 %v1601_v7, %v1617_v8  ;;  %v1622_v4 = vadd.s32 127, %v1621_v28  ;;  %v1916_v27 = vsel %vm1914_vm7, %v1915_v44, %v4519_v13 }
 0x1ab   : > { %v1751_v19 = vsel %vm1744_vm1, %v1747_v51, %v1750_v62  ;;  %v1917_v21 = vadd.s32 %v1916_v27, %v1912_v17  ;;  %v1760_v14 = vand.u32 8388607, %v1753_v52  ;;  %v1765_v16 = vsel %vm1764_vm8, %v1763_v34, 0 }
 0x1ac   : > { %v1752_v35 = vsel %vm1741_vm4, nan, %v1751_v19  ;;  %v1620_v55 = vor.u32 %v1619_v43, %v1618_v41  ;;  %v1623_v48 = vshll.u32 %v1622_v4, 23  ;;  %v1634_v33 = vsel %vm4512_vm5, 0, %v1632_v23 }
 0x1ad   : > { %3004 = vst [vmem:[%s4440_s4 + $0x18] sm:$0xff] %v1752_v35  ;;  %v1918_v29 = vadd.s32 536870912, %v1917_v21  ;;  %v1767_v32 = vand.u32 31, %v1765_v16  ;;  %v1638_v24 = vadd.s32 3, %v1634_v33  ;;  %v1761_v26 = vor.u32 8388608, %v1760_v14 }
 0x1ae   : > { %v1624_v54 = vor.u32 4788187, %v1623_v48  ;;  %v1627_v45 = vcvt.s32.f32 %v1620_v55  ;;  %v4565_v58 = vshrl.u32 %v1765_v16, 5  ;;  %vm1859_vm9 = vcmp.lt.s32.totalorder %v4234_v10, 0 }
 0x1af   : > { %v4563_v22 = vshrl.u32 %v1918_v29, 30  ;;  %v1768_v13 = vsub.s32 32, %v1767_v32  ;;  %v1770_v47 = vshll.u32 %v3807_v57, %v1767_v32  ;;  %v1773_v49 = vshll.u32 %v3808_v61, %v1767_v32 }
 0x1b0   : > { %v1625_v18 = vand.u32 2147483647, %v1624_v54  ;;  %v1776_v7 = vshll.u32 %v3809_v63, %v1767_v32  ;;  %v1779_v44 = vshll.u32 %v3810_v1, %v1767_v32  ;;  %v4579_v41 = vand.u32 3, %v1638_v24 }
 0x1b1   : > { %v1920_v2 = vshll.u32 %v4563_v22, 30  ;;  %v1771_v37 = vshrl.u32 %v3808_v61, %v1768_v13  ;;  %v1774_v60 = vshrl.u32 %v3809_v63, %v1768_v13  ;;  %v1777_v0 = vshrl.u32 %v3810_v1, %v1768_v13 }
 0x1b2   : > { %v1628_v34 = vmul.f32 %v1627_v45, %v1625_v18  ;;  %v1780_v12 = vshrl.u32 %v3811_v5, %v1768_v13  ;;  %v1783_v56 = vshrl.u32 %v3812_v3, %v1768_v13  ;;  %v1782_v4 = vshll.u32 %v3811_v5, %v1767_v32 }
 0x1b3   : > { %v4575_v23 = vsub.s32 %v1917_v21, %v1920_v2  ;;  %v1772_v28 = vor.u32 %v1771_v37, %v1770_v47  ;;  %v1775_v17 = vor.u32 %v1774_v60, %v1773_v49  ;;  %v1778_v62 = vor.u32 %v1777_v0, %v1776_v7  ;;  %v4615_v7 = vpop.f32.mrb[13].mxu0 }
 0x1b4   : > { %v1629_v8 = vxor.u32 2147483648, %v1628_v34  ;;  %v1781_v43 = vor.u32 %v1780_v12, %v1779_v44  ;;  %v1769_v19 = vshrl.u32 %v3807_v57, %v1768_v13  ;;  %vm1785_vm10 = vcmp.lt.s32.totalorder %v4565_v58, 1 }
 0x1b5   : > { %v1923_v51 = vsub.s32 0, %v4575_v23  ;;  %v1801_v21 = vshll.u32 %v1761_v26, 8  ;;  %v1784_v35 = vor.u32 %v1783_v56, %v1782_v4  ;;  %vm1788_vm13 = vcmp.lt.s32.totalorder %v4565_v58, 4 }
 0x1b6   : > { %v1630_v27 = vsel %vm1547_vm11, %v1629_v8, %v1628_v34  ;;  %v1790_v55 = vsel %vm1788_vm13, %v1778_v62, 2102212464  ;;  %v1793_v48 = vsel %vm1785_vm10, %v1772_v28, %v1775_v17  ;;  %v1794_v33 = vsel %vm1788_vm13, %v1781_v43, 920167782 }
 0x1b7   : > { %v1633_v14 = vsel %vm4512_vm5, %v4134_v9, %v1630_v27  ;;  %v3149_v16 = vmin.u32 %v1923_v51, %v4575_v23  ;;  %vm1786_vm11 = vcmp.lt.s32.totalorder %v4565_v58, 2  ;;  %vm1787_vm14 = vcmp.lt.s32.totalorder %v4565_v58, 3  ;;  %v4635_v51 = vpop.f32.mrb[12].mxu1 }
 0x1b8   : > { %3675 = vcosq.f32 %v1633_v14  ;;  %v1943_v30 = vsub.s32 4, %v4563_v22  ;;  %v1789_v32 = vsel %vm1785_vm10, %v1769_v19, %v1772_v28  ;;  %v1795_v54 = vsel %vm1787_vm14, %v1778_v62, %v1794_v33 }
 0x1b9   : > { %3677 = vsinq.f32 %v1633_v14  ;;  %v1925_v29 = vclz %v3149_v16  ;;  %v1797_v24 = vsel %vm1785_vm10, %v1775_v17, %v1778_v62  ;;  %v1791_v13 = vsel %vm1787_vm14, %v1775_v17, %v1790_v55 }
 0x1ba   : > { %v1796_v18 = vsel %vm1786_vm11, %v1793_v48, %v1795_v54  ;;  %v1798_v45 = vsel %vm1788_vm13, %v1784_v35, 1326507024  ;;  %v2068_v49 = vand.u32 2139095040, %v4530_v38  ;;  %vm4619_vm12 = vcmp.le.f32.partialorder %v1857_v6, 0.7853982 }
 0x1bb   : > { %v3150_v26 = vadd.s32 4294967294, %v1925_v29  ;;  %v1799_v47 = vsel %vm1787_vm14, %v1781_v43, %v1798_v45  ;;  %v4610_v2 = vmul.u32.u64.low %v1801_v21, %v1796_v18  ;;  %v4611_v37 = vmul.u32.u64.high %v1801_v21, %v1796_v18, %v4610_v2 }
 0x1bc   : > { %v1913_v60 = vadd.s32 %v4518_v31, %v4526_v20  ;;  %v1800_v0 = vsel %vm1786_vm11, %v1797_v24, %v1799_v47  ;;  %v2069_v8 = vshrl.u32 %v2068_v49, 23  ;;  %v1944_v6 = vsel %vm1859_vm9, %v1943_v30, %v4563_v22 }
 0x1bd   : > { %vm3151_vm15 = vcmp.lt.s32.totalorder %v3150_v26, 0  ;;  %v4627_v44 = vmul.u32.u64.low %v1801_v21, %v1800_v0  ;;  %v4628_v56 = vmul.u32.u64.high %v1801_v21, %v1800_v0, %v4627_v44  ;;  %v1792_v62 = vsel %vm1786_vm11, %v1789_v32, %v1791_v13 }
 0x1be   : > { %v1928_v12 = vsel %vm3151_vm15, 0, %v3150_v26  ;;  %vm1640_vm0 = vcmp.lt.s32.totalorder %v4579_v41, 2  ;;  %vm1641_vm2 = vcmp.eq.s32.totalorder %v4579_v41, 0  ;;  %v1811_v31 = vadd.s32 1, %v4611_v37 }
 0x1bf   : > { %v1929_v28 = vsub.s32 32, %v1928_v12  ;;  %v1933_v17 = vsub.s32 4294967266, %v1928_v12  ;;  %v3156_v20 = vadd.s32 4294967169, %v2069_v8  ;;  %v1930_v43 = vshll.u32 %v4575_v23, %v1928_v12 }
 0x1c0   : > { %v2065_v19 = vand.u32 2147483647, %v4530_v38  ;;  %v1946_v22 = vsel %vm4619_vm12, 0, %v1944_v6  ;;  %v1808_v58 = vmul.u32 %v1801_v21, %v1792_v62  ;;  %vm1810_vm1 = vc.u32 %v4628_v56, %v4610_v2 }
 0x1c1   : > { %v1931_v4 = vshrl.u32 %v1913_v60, %v1929_v28  ;;  %v1934_v27 = vadd.s32 127, %v1933_v17  ;;  %v2075_v16 = vadd.s32 1, %v3156_v20  ;;  %v1812_v29 = vsel %vm1810_vm1, %v1811_v31, %v4611_v37 }
 0x1c2   : > { %v3676_v14 = vpop.eup %3675  ;;  %vm1644_vm3 = vcmp.eq.s32.totalorder %v4579_v41, 2  ;;  %v1813_v30 = vadd.s32 %v1812_v29, %v1808_v58  ;;  %v1950_v24 = vadd.s32 3, %v1946_v22  ;;  %v2072_v18 = vand.u32 8388607, %v2065_v19 }
 0x1c3   : > { %v3678_v35 = vpop.eup %3677  ;;  %v1645_v55 = vxor.u32 2147483648, %v3676_v14  ;;  %v1932_v48 = vor.u32 %v1931_v4, %v1930_v43  ;;  %v1935_v33 = vshll.u32 %v1934_v27, 23  ;;  %vm2076_vm4 = vcmp.gt.s32.totalorder %v2075_v16, 0 }
 0x1c4   : > { %v1642_v23 = vxor.u32 2147483648, %v3678_v35  ;;  %v2077_v21 = vsel %vm2076_vm4, %v2075_v16, 0  ;;  %v1814_v13 = vadd.s32 536870912, %v1813_v30  ;;  %vm1637_vm5 = vweird.f32 %v4134_v9 }
 0x1c5   : > { %v1646_v32 = vsel %vm1644_vm3, %v1645_v55, %v3678_v35  ;;  %v1936_v54 = vor.u32 4788187, %v1935_v33  ;;  %v2079_v45 = vand.u32 31, %v2077_v21  ;;  %v1939_v49 = vcvt.s32.f32 %v1932_v48 }
 0x1c6   : > { %v1643_v26 = vsel %vm1641_vm2, %v3676_v14, %v1642_v23  ;;  %v4655_v0 = vshrl.u32 %v1814_v13, 30  ;;  %v1964_v44 = vand.u32 2139095040, %v4538_v59  ;;  %v4659_v28 = vand.u32 3, %v1950_v24 }
 0x1c7   : > { %v1647_v47 = vsel %vm1640_vm0, %v1643_v26, %v1646_v32  ;;  %v1937_v37 = vand.u32 2147483647, %v1936_v54  ;;  %v2080_v12 = vsub.s32 32, %v2079_v45  ;;  %v2073_v6 = vor.u32 8388608, %v2072_v18 }
 0x1c8   : > { %v1648_v60 = vsel %vm1637_vm5, nan, %v1647_v47  ;;  %v1816_v17 = vshll.u32 %v4655_v0, 30  ;;  %v2082_v9 = vshll.u32 %v3807_v57, %v2079_v45  ;;  %v2078_v27 = vshrl.u32 %v2077_v21, 5 }
 0x1c9   : > { %3003 = vst [vmem:[%s4440_s4 + $0x10] sm:$0xff] %v1648_v60  ;;  %v1940_v8 = vmul.f32 %v1939_v49, %v1937_v37  ;;  %v2083_v41 = vshrl.u32 %v3808_v61, %v2080_v12  ;;  %v2086_v31 = vshrl.u32 %v3809_v63, %v2080_v12  ;;  %v2089_v20 = vshrl.u32 %v3810_v1, %v2080_v12 }
 0x1ca   : > { %v2092_v43 = vshrl.u32 %v3811_v5, %v2080_v12  ;;  %v4667_v4 = vsub.s32 %v1813_v30, %v1816_v17  ;;  %v2085_v14 = vshll.u32 %v3808_v61, %v2079_v45  ;;  %v1965_v22 = vshrl.u32 %v1964_v44, 23 }
 0x1cb   : > { %v1941_v62 = vxor.u32 2147483648, %v1940_v8  ;;  %v2084_v16 = vor.u32 %v2083_v41, %v2082_v9  ;;  %v2088_v35 = vshll.u32 %v3809_v63, %v2079_v45  ;;  %v2091_v55 = vshll.u32 %v3810_v1, %v2079_v45  ;;  %v4694_v9 = vpop.f32.mrb[13].mxu1 }
 0x1cc   : > { %v1819_v33 = vsub.s32 0, %v4667_v4  ;;  %v2087_v29 = vor.u32 %v2086_v31, %v2085_v14  ;;  %v2094_v23 = vshll.u32 %v3811_v5, %v2079_v45  ;;  %vm1755_vm6 = vcmp.lt.s32.totalorder %v4238_v11, 0 }
 0x1cd   : > { %v1942_v58 = vsel %vm1859_vm9, %v1941_v62, %v1940_v8  ;;  %v2090_v30 = vor.u32 %v2089_v20, %v2088_v35  ;;  %v2093_v32 = vor.u32 %v2092_v43, %v2091_v55  ;;  %v2095_v54 = vshrl.u32 %v3812_v3, %v2080_v12 }
 0x1ce   : > { %v1945_v48 = vsel %vm4619_vm12, %v4234_v10, %v1942_v58  ;;  %v3145_v24 = vmin.u32 %v1819_v33, %v4667_v4  ;;  %v4682_v21 = vshll.u32 %v2073_v6, 8  ;;  %v3152_v26 = vadd.s32 4294967169, %v1965_v22  ;;  %v4692_v6 = vpop.f32.mrb[14].mxu0 }
 0x1cf   : > { %3679 = vcosq.f32 %v1945_v48  ;;  %v1839_v34 = vsub.s32 4, %v4655_v0  ;;  %v2081_v13 = vshrl.u32 %v3807_v57, %v2080_v12  ;;  %v2096_v18 = vor.u32 %v2095_v54, %v2094_v23 }
 0x1d0   : > { %3681 = vsinq.f32 %v1945_v48  ;;  %vm2097_vm7 = vcmp.lt.s32.totalorder %v2078_v27, 1  ;;  %v1821_v45 = vclz %v3145_v24  ;;  %vm2099_vm8 = vcmp.lt.s32.totalorder %v2078_v27, 3 }
 0x1d1   : > { %vm2100_vm9 = vcmp.lt.s32.totalorder %v2078_v27, 4  ;;  %v2105_v47 = vsel %vm2097_vm7, %v2084_v16, %v2087_v29  ;;  %vm1956_vm10 = vcmp.eq.s32.totalorder %v4659_v28, 2  ;;  %v2109_v60 = vsel %vm2097_vm7, %v2087_v29, %v2090_v30 }
 0x1d2   : > { %v2102_v37 = vsel %vm2100_vm9, %v2090_v30, 2102212464  ;;  %v2106_v49 = vsel %vm2100_vm9, %v2093_v32, 920167782  ;;  %v2110_v44 = vsel %vm2100_vm9, %v2096_v18, 1326507024  ;;  %v2101_v62 = vsel %vm2097_vm7, %v2081_v13, %v2084_v16 }
 0x1d3   : > { %vm1953_vm13 = vcmp.eq.s32.totalorder %v4659_v28, 0  ;;  %v3146_v8 = vadd.s32 4294967294, %v1821_v45  ;;  %vm2098_vm11 = vcmp.lt.s32.totalorder %v2078_v27, 2  ;;  %v2107_v12 = vsel %vm2099_vm8, %v2090_v30, %v2106_v49 }
 0x1d4   : > { %v2111_v17 = vsel %vm2099_vm8, %v2093_v32, %v2110_v44  ;;  %vm1952_vm14 = vcmp.lt.s32.totalorder %v4659_v28, 2  ;;  %vm4699_vm12 = vcmp.le.f32.partialorder %v1753_v52, 0.7853982  ;;  %v2108_v31 = vsel %vm2098_vm11, %v2105_v47, %v2107_v12 }
 0x1d5   : > { %v2112_v20 = vsel %vm2098_vm11, %v2109_v60, %v2111_v17  ;;  %v1961_v43 = vand.u32 2147483647, %v4538_v59  ;;  %vm1949_vm15 = vweird.f32 %v4234_v10  ;;  %vm3147_vm0 = vcmp.lt.s32.totalorder %v3146_v8, 0 }
 0x1d6   : > { %v2103_v14 = vsel %vm2099_vm8, %v2087_v29, %v2102_v37  ;;  %v4710_v22 = vmul.u32.u64.low %v4682_v21, %v2112_v20  ;;  %v4711_v58 = vmul.u32.u64.high %v4682_v21, %v2112_v20, %v4710_v22  ;;  %v1824_v52 = vsel %vm3147_vm0, 0, %v3146_v8 }
 0x1d7   : > { %v4714_v35 = vmul.u32.u64.low %v4682_v21, %v2108_v31  ;;  %v4715_v55 = vmul.u32.u64.high %v4682_v21, %v2108_v31, %v4714_v35  ;;  %v1971_v16 = vadd.s32 1, %v3152_v26  ;;  %v1809_v48 = vadd.s32 %v4610_v2, %v4628_v56 }
 0x1d8   : > { %v1825_v33 = vsub.s32 32, %v1824_v52  ;;  %v1829_v23 = vsub.s32 4294967266, %v1824_v52  ;;  %v1840_v29 = vsel %vm1755_vm6, %v1839_v34, %v4655_v0  ;;  %v2104_v32 = vsel %vm2098_vm11, %v2101_v62, %v2103_v14 }
 0x1d9   : > { %v3680_v30 = vpop.eup %3679  ;;  %vm1972_vm2 = vcmp.gt.s32.totalorder %v1971_v16, 0  ;;  %v4726_v54 = vadd.f32 %v4150_v50, %v4222_v42  ;;  %v4730_v24 = vadd.f32 %v4210_v40, %v4341_v46  ;;  %v1826_v56 = vshll.u32 %v4667_v4, %v1824_v52 }
 0x1da   : > { %v3682_v26 = vpop.eup %3681  ;;  %v1957_v2 = vxor.u32 2147483648, %v3680_v30  ;;  %v1827_v13 = vshrl.u32 %v1809_v48, %v1825_v33  ;;  %v1830_v18 = vadd.s32 127, %v1829_v23  ;;  %vm2122_vm1 = vc.u32 %v4711_v58, %v4714_v35 }
 0x1db   : > { %v1954_v45 = vxor.u32 2147483648, %v3682_v26  ;;  %v2123_v0 = vadd.s32 1, %v4715_v55  ;;  %v1973_v27 = vsel %vm1972_vm2, %v1971_v16, 0  ;;  %v2120_v46 = vmul.u32 %v4682_v21, %v2104_v32 }
 0x1dc   : > { %v1958_v50 = vsel %vm1956_vm10, %v1957_v2, %v3682_v26  ;;  %v1828_v42 = vor.u32 %v1827_v13, %v1826_v56  ;;  %v1831_v40 = vshll.u32 %v1830_v18, 23  ;;  %v1968_v47 = vand.u32 8388607, %v1961_v43 }
 0x1dd   : > { %v1955_v4 = vsel %vm1953_vm13, %v3680_v30, %v1954_v45  ;;  %v2124_v34 = vsel %vm2122_vm1, %v2123_v0, %v4715_v55  ;;  %v1975_v37 = vand.u32 31, %v1973_v27  ;;  %v1842_v44 = vsel %vm4699_vm12, 0, %v1840_v29 }
 0x1de   : > { %v1959_v49 = vsel %vm1952_vm14, %v1955_v4, %v1958_v50  ;;  %v1832_v60 = vor.u32 4788187, %v1831_v40  ;;  %v2125_v8 = vadd.s32 %v2124_v34, %v2120_v46  ;;  %v1835_v62 = vcvt.s32.f32 %v1828_v42 }
 0x1df   : > { %v1960_v21 = vsel %vm1949_vm15, nan, %v1959_v49  ;;  %v1976_v12 = vsub.s32 32, %v1975_v37  ;;  %v1846_v20 = vadd.s32 3, %v1842_v44  ;;  %v1969_v14 = vor.u32 8388608, %v1968_v47 }
 0x1e0   : > { %3006 = vst [vmem:[%s4440_s4 + $0x28] sm:$0xff] %v1960_v21  ;;  %v1833_v17 = vand.u32 2147483647, %v1832_v60  ;;  %v2126_v31 = vadd.s32 536870912, %v2125_v8  ;;  %v1978_v10 = vshll.u32 %v3807_v57, %v1975_v37  ;;  %v1981_v33 = vshll.u32 %v3808_v61, %v1975_v37 }
 0x1e1   : > { %v1979_v22 = vshrl.u32 %v3808_v61, %v1976_v12  ;;  %v1982_v28 = vshrl.u32 %v3809_v63, %v1976_v12  ;;  %v1985_v16 = vshrl.u32 %v3810_v1, %v1976_v12  ;;  %v1988_v48 = vshrl.u32 %v3811_v5, %v1976_v12 }
 0x1e2   : > { %v1836_v52 = vmul.f32 %v1835_v62, %v1833_v17  ;;  %v2127_v55 = vshrl.u32 %v2126_v31, 30  ;;  %v1987_v23 = vshll.u32 %v3810_v1, %v1975_v37  ;;  %v1991_v29 = vshrl.u32 %v3812_v3, %v1976_v12 }
 0x1e3   : > { %v1974_v26 = vshrl.u32 %v1973_v27, 5  ;;  %v1984_v2 = vshll.u32 %v3809_v63, %v1975_v37  ;;  %v1980_v56 = vor.u32 %v1979_v22, %v1978_v10  ;;  %v1983_v13 = vor.u32 %v1982_v28, %v1981_v33 }
 0x1e4   : > { %v1837_v30 = vxor.u32 2147483648, %v1836_v52  ;;  %v2128_v32 = vshll.u32 %v2127_v55, 30  ;;  %v1989_v18 = vor.u32 %v1988_v48, %v1987_v23  ;;  %v1990_v45 = vshll.u32 %v3811_v5, %v1975_v37 }
 0x1e5   : > { %v4763_v50 = vand.u32 3, %v1846_v20  ;;  %v1986_v40 = vor.u32 %v1985_v16, %v1984_v2  ;;  %v1977_v27 = vshrl.u32 %v3807_v57, %v1976_v12  ;;  %v2009_v34 = vshll.u32 %v1969_v14, 8 }
 0x1e6   : > { %v1838_v0 = vsel %vm1755_vm6, %v1837_v30, %v1836_v52  ;;  %v4765_v42 = vsub.s32 %v2125_v8, %v2128_v32  ;;  %v1992_v4 = vor.u32 %v1991_v29, %v1990_v45  ;;  %vm1993_vm3 = vcmp.lt.s32.totalorder %v1974_v26, 1  ;;  %v4805_v45 = vpop.f32.mrb[14].mxu1 }
 0x1e7   : > { %v1841_v46 = vsel %vm4699_vm12, %v4238_v11, %v1838_v0  ;;  %vm1996_vm4 = vcmp.lt.s32.totalorder %v1974_v26, 4  ;;  %vm1995_vm5 = vcmp.lt.s32.totalorder %v1974_v26, 3  ;;  %v2001_v37 = vsel %vm1993_vm3, %v1980_v56, %v1983_v13 }
 0x1e8   : > { %3683 = vcosq.f32 %v1841_v46  ;;  %v2131_v47 = vsub.s32 0, %v4765_v42  ;;  %v2002_v49 = vsel %vm1996_vm4, %v1989_v18, 920167782  ;;  %vm1994_vm6 = vcmp.lt.s32.totalorder %v1974_v26, 2 }
 0x1e9   : > { %3685 = vsinq.f32 %v1841_v46  ;;  %v1998_v44 = vsel %vm1996_vm4, %v1986_v40, 2102212464  ;;  %v2003_v41 = vsel %vm1995_vm5, %v1986_v40, %v2002_v49  ;;  %v2151_v8 = vsub.s32 4, %v2127_v55 }
 0x1ea   : > { %v3157_v60 = vmin.u32 %v2131_v47, %v4765_v42  ;;  %v2004_v21 = vsel %vm1994_vm6, %v2001_v37, %v2003_v41  ;;  %v2005_v12 = vsel %vm1993_vm3, %v1983_v13, %v1986_v40  ;;  %v2006_v17 = vsel %vm1996_vm4, %v1992_v4, 1326507024 }
 0x1eb   : > { %vm4778_vm7 = vcmp.le.f32.partialorder %v2065_v19, 0.7853982  ;;  %v1997_v20 = vsel %vm1993_vm3, %v1977_v27, %v1980_v56  ;;  %v1999_v14 = vsel %vm1995_vm5, %v1983_v13, %v1998_v44  ;;  %v2007_v22 = vsel %vm1995_vm5, %v1989_v18, %v2006_v17  ;;  %v4790_v19 = vpop.f32.mrb[15].mxu0 }
 0x1ec   : > { %v2133_v31 = vclz %v3157_v60  ;;  %v4783_v28 = vmul.u32.u64.low %v2009_v34, %v2004_v21  ;;  %v4784_v52 = vmul.u32.u64.high %v2009_v34, %v2004_v21, %v4783_v28  ;;  %vm2067_vm8 = vcmp.lt.s32.totalorder %v4530_v38, 0 }
 0x1ed   : > { %v2008_v48 = vsel %vm1994_vm6, %v2005_v12, %v2007_v22  ;;  %v2276_v10 = vand.u32 2139095040, %v4726_v54  ;;  %vm1845_vm9 = vweird.f32 %v4238_v11  ;;  %vm1849_vm10 = vcmp.eq.s32.totalorder %v4763_v50, 0 }
 0x1ee   : > { %v3158_v16 = vadd.s32 4294967294, %v2133_v31  ;;  %v2152_v33 = vsel %vm2067_vm8, %v2151_v8, %v2127_v55  ;;  %v4796_v23 = vmul.u32.u64.low %v2009_v34, %v2008_v48  ;;  %v4797_v29 = vmul.u32.u64.high %v2009_v34, %v2008_v48, %v4796_v23 }
 0x1ef   : > { %vm1852_vm13 = vcmp.eq.s32.totalorder %v4763_v50, 2  ;;  %v2000_v30 = vsel %vm1994_vm6, %v1997_v20, %v1999_v14  ;;  %v2277_v32 = vshrl.u32 %v2276_v10, 23  ;;  %v2121_v2 = vadd.s32 %v4714_v35, %v4711_v58 }
 0x1f0   : > { %vm3159_vm11 = vcmp.lt.s32.totalorder %v3158_v16, 0  ;;  %v2019_v13 = vadd.s32 1, %v4784_v52  ;;  %v2273_v18 = vand.u32 2147483647, %v4726_v54  ;;  %v2154_v46 = vsel %vm4778_vm7, 0, %v2152_v33 }
 0x1f1   : > { %v2136_v56 = vsel %vm3159_vm11, 0, %v3158_v16  ;;  %v3164_v27 = vadd.s32 4294967169, %v2277_v32  ;;  %v2016_v37 = vmul.u32 %v2009_v34, %v2000_v30  ;;  %vm2018_vm14 = vc.u32 %v4797_v29, %v4783_v28 }
 0x1f2   : > { %v3684_v55 = vpop.eup %3683  ;;  %v2137_v0 = vsub.s32 32, %v2136_v56  ;;  %v2141_v40 = vsub.s32 4294967266, %v2136_v56  ;;  %v2138_v47 = vshll.u32 %v4765_v42, %v2136_v56  ;;  %v2020_v60 = vsel %vm2018_vm14, %v2019_v13, %v4784_v52 }
 0x1f3   : > { %v3686_v26 = vpop.eup %3685  ;;  %v1853_v4 = vxor.u32 2147483648, %v3684_v55  ;;  %v2021_v41 = vadd.s32 %v2020_v60, %v2016_v37  ;;  %v2283_v8 = vadd.s32 1, %v3164_v27  ;;  %v2172_v21 = vand.u32 2139095040, %v4730_v24 }
 0x1f4   : > { %v1850_v58 = vxor.u32 2147483648, %v3686_v26  ;;  %v2139_v35 = vshrl.u32 %v2121_v2, %v2137_v0  ;;  %v2142_v49 = vadd.s32 127, %v2141_v40  ;;  %vm1848_vm12 = vcmp.lt.s32.totalorder %v4763_v50, 2 }
 0x1f5   : > { %v1854_v44 = vsel %vm1852_vm13, %v1853_v4, %v3686_v26  ;;  %v2158_v31 = vadd.s32 3, %v2154_v46  ;;  %v2022_v20 = vadd.s32 536870912, %v2021_v41  ;;  %vm2284_vm15 = vcmp.gt.s32.totalorder %v2283_v8, 0 }
 0x1f6   : > { %v1851_v42 = vsel %vm1849_vm10, %v3684_v55, %v1850_v58  ;;  %v2140_v34 = vor.u32 %v2139_v35, %v2138_v47  ;;  %v2143_v12 = vshll.u32 %v2142_v49, 23  ;;  %v2280_v52 = vand.u32 8388607, %v2273_v18 }
 0x1f7   : > { %v1855_v17 = vsel %vm1848_vm12, %v1851_v42, %v1854_v44  ;;  %v2285_v16 = vsel %vm2284_vm15, %v2283_v8, 0  ;;  %v2023_v48 = vshrl.u32 %v2022_v20, 30  ;;  %v2173_v33 = vshrl.u32 %v2172_v21, 23 }
 0x1f8   : > { %v1856_v14 = vsel %vm1845_vm9, nan, %v1855_v17  ;;  %v2144_v22 = vor.u32 4788187, %v2143_v12  ;;  %v2287_v10 = vand.u32 31, %v2285_v16  ;;  %v2147_v23 = vcvt.s32.f32 %v2140_v34 }
 0x1f9   : > { %3005 = vst [vmem:[%s4440_s4 + $0x20] sm:$0xff] %v1856_v14  ;;  %v4826_v30 = vadd.f32 %v4336_v25, %v4438_v39  ;;  %v4828_v32 = vand.u32 3, %v2158_v31  ;;  %vm1963_vm0 = vcmp.lt.s32.totalorder %v4538_v59, 0  ;;  %v2024_v11 = vshll.u32 %v2023_v48, 30 }
 0x1fa   : > { %v2145_v50 = vand.u32 2147483647, %v2144_v22  ;;  %v2288_v2 = vsub.s32 32, %v2287_v10  ;;  %v2017_v13 = vadd.s32 %v4783_v28, %v4797_v29  ;;  %v2281_v55 = vor.u32 8388608, %v2280_v52 }
 0x1fb   : > { %v2169_v0 = vand.u32 2147483647, %v4730_v24  ;;  %v4834_v40 = vsub.s32 %v2021_v41, %v2024_v11  ;;  %v4836_v46 = vshrl.u32 %v2285_v16, 5  ;;  %v3160_v39 = vadd.s32 4294967169, %v2173_v33 }
 0x1fc   : > { %v2148_v56 = vmul.f32 %v2147_v23, %v2145_v50  ;;  %v2291_v25 = vshrl.u32 %v3808_v61, %v2288_v2  ;;  %v2290_v26 = vshll.u32 %v3807_v57, %v2287_v10  ;;  %v2294_v4 = vshrl.u32 %v3809_v63, %v2288_v2 }
 0x1fd   : > { %v2297_v47 = vshrl.u32 %v3810_v1, %v2288_v2  ;;  %v2027_v37 = vsub.s32 0, %v4834_v40  ;;  %v2293_v28 = vshll.u32 %v3808_v61, %v2287_v10  ;;  %v2296_v29 = vshll.u32 %v3809_v63, %v2287_v10 }
 0x1fe   : > { %v2149_v27 = vxor.u32 2147483648, %v2148_v56  ;;  %v2300_v58 = vshrl.u32 %v3811_v5, %v2288_v2  ;;  %v2047_v49 = vsub.s32 4, %v2023_v48  ;;  %v2292_v60 = vor.u32 %v2291_v25, %v2290_v26 }
 0x1ff   : > { %v2299_v44 = vshll.u32 %v3810_v1, %v2287_v10  ;;  %v3153_v8 = vmin.u32 %v2027_v37, %v4834_v40  ;;  %v2295_v21 = vor.u32 %v2294_v4, %v2293_v28  ;;  %v2298_v42 = vor.u32 %v2297_v47, %v2296_v29  ;;  %v4882_v47 = vpop.f32.mrb[15].mxu1 }
 0x200   : > { %v2150_v35 = vsel %vm2067_vm8, %v2149_v27, %v2148_v56  ;;  %v2302_v12 = vshll.u32 %v3811_v5, %v2287_v10  ;;  %v2303_v17 = vshrl.u32 %v3812_v3, %v2288_v2  ;;  %v4855_v20 = vshll.u32 %v2281_v55, 8 }
 0x201   : > { %v2153_v41 = vsel %vm4778_vm7, %v4530_v38, %v2150_v35  ;;  %v2301_v34 = vor.u32 %v2300_v58, %v2299_v44  ;;  %v2029_v31 = vclz %v3153_v8  ;;  %v2179_v14 = vadd.s32 1, %v3160_v39 }
 0x202   : > { %3687 = vcosq.f32 %v2153_v41  ;;  %vm4859_vm2 = vcmp.le.f32.partialorder %v1961_v43, 0.7853982  ;;  %v2048_v22 = vsel %vm1963_vm0, %v2047_v49, %v2023_v48  ;;  %v2289_v52 = vshrl.u32 %v3807_v57, %v2288_v2 }
 0x203   : > { %3689 = vsinq.f32 %v2153_v41  ;;  %v2304_v16 = vor.u32 %v2303_v17, %v2302_v12  ;;  %vm2305_vm1 = vcmp.lt.s32.totalorder %v4836_v46, 1  ;;  %v3154_v10 = vadd.s32 4294967294, %v2029_v31 }
 0x204   : > { %vm2307_vm3 = vcmp.lt.s32.totalorder %v4836_v46, 3  ;;  %vm2308_vm4 = vcmp.lt.s32.totalorder %v4836_v46, 4  ;;  %v2313_v33 = vsel %vm2305_vm1, %v2292_v60, %v2295_v21  ;;  %v2317_v43 = vsel %vm2305_vm1, %v2295_v21, %v2298_v42 }
 0x205   : > { %v2310_v50 = vsel %vm2308_vm4, %v2298_v42, 2102212464  ;;  %v2314_v23 = vsel %vm2308_vm4, %v2301_v34, 920167782  ;;  %v2318_v11 = vsel %vm2308_vm4, %v2304_v16, 1326507024  ;;  %v2309_v55 = vsel %vm2305_vm1, %v2289_v52, %v2292_v60 }
 0x206   : > { %vm3155_vm5 = vcmp.lt.s32.totalorder %v3154_v10, 0  ;;  %vm2306_vm6 = vcmp.lt.s32.totalorder %v4836_v46, 2  ;;  %v2315_v48 = vsel %vm2307_vm3, %v2298_v42, %v2314_v23  ;;  %v2319_v2 = vsel %vm2307_vm3, %v2301_v34, %v2318_v11 }
 0x207   : > { %vm2160_vm7 = vcmp.lt.s32.totalorder %v4828_v32, 2  ;;  %v2032_v56 = vsel %vm3155_vm5, 0, %v3154_v10  ;;  %v2316_v25 = vsel %vm2306_vm6, %v2313_v33, %v2315_v48  ;;  %v2320_v39 = vsel %vm2306_vm6, %v2317_v43, %v2319_v2 }
 0x208   : > { %vm2157_vm8 = vweird.f32 %v4530_v38  ;;  %v2033_v27 = vsub.s32 32, %v2032_v56  ;;  %v2037_v26 = vsub.s32 4294967266, %v2032_v56  ;;  %v2311_v4 = vsel %vm2307_vm3, %v2295_v21, %v2310_v50 }
 0x209   : > { %vm2180_vm9 = vcmp.gt.s32.totalorder %v2179_v14, 0  ;;  %v4885_v37 = vmul.u32.u64.low %v4855_v20, %v2320_v39  ;;  %v4886_v28 = vmul.u32.u64.high %v4855_v20, %v2320_v39, %v4885_v37  ;;  %v2034_v35 = vshll.u32 %v4834_v40, %v2032_v56 }
 0x20a   : > { %v4889_v29 = vmul.u32.u64.low %v4855_v20, %v2316_v25  ;;  %v4890_v58 = vmul.u32.u64.high %v4855_v20, %v2316_v25, %v4889_v29  ;;  %v2035_v49 = vshrl.u32 %v2017_v13, %v2033_v27  ;;  %v2038_v60 = vadd.s32 127, %v2037_v26 }
 0x20b   : > { %v2181_v44 = vsel %vm2180_vm9, %v2179_v14, 0  ;;  %vm2161_vm10 = vcmp.eq.s32.totalorder %v4828_v32, 0  ;;  %vm2164_vm13 = vcmp.eq.s32.totalorder %v4828_v32, 2  ;;  %v2312_v8 = vsel %vm2306_vm6, %v2309_v55, %v2311_v4 }
 0x20c   : > { %v3688_v41 = vpop.eup %3687  ;;  %v2183_v21 = vand.u32 31, %v2181_v44  ;;  %v2036_v12 = vor.u32 %v2035_v49, %v2034_v35  ;;  %v2039_v17 = vshll.u32 %v2038_v60, 23  ;;  %v2050_v31 = vsel %vm4859_vm2, 0, %v2048_v22 }
 0x20d   : > { %v3690_v42 = vpop.eup %3689  ;;  %v2165_v34 = vxor.u32 2147483648, %v3688_v41  ;;  %vm2330_vm11 = vc.u32 %v4886_v28, %v4889_v29  ;;  %v2331_v13 = vadd.s32 1, %v4890_v58  ;;  %v2176_v14 = vand.u32 8388607, %v2169_v0 }
 0x20e   : > { %v2162_v40 = vxor.u32 2147483648, %v3690_v42  ;;  %v2040_v46 = vor.u32 4788187, %v2039_v17  ;;  %v2328_v16 = vmul.u32 %v4855_v20, %v2312_v8  ;;  %v2184_v10 = vsub.s32 32, %v2183_v21 }
 0x20f   : > { %v2166_v52 = vsel %vm2164_vm13, %v2165_v34, %v3690_v42  ;;  %v2054_v50 = vadd.s32 3, %v2050_v31  ;;  %v2332_v22 = vsel %vm2330_vm11, %v2331_v13, %v4890_v58  ;;  %v4909_v23 = vshrl.u32 %v2181_v44, 5 }
 0x210   : > { %v2163_v33 = vsel %vm2161_vm10, %v3688_v41, %v2162_v40  ;;  %v2041_v11 = vand.u32 2147483647, %v2040_v46  ;;  %v2043_v48 = vcvt.s32.f32 %v2036_v12  ;;  %v2333_v2 = vadd.s32 %v2332_v22, %v2328_v16 }
 0x211   : > { %v2167_v43 = vsel %vm2160_vm7, %v2163_v33, %v2166_v52  ;;  %v2186_v20 = vshll.u32 %v3807_v57, %v2183_v21  ;;  %v2187_v55 = vshrl.u32 %v3808_v61, %v2184_v10  ;;  %v2190_v25 = vshrl.u32 %v3809_v63, %v2184_v10 }
 0x212   : > { %v2168_v56 = vsel %vm2157_vm8, nan, %v2167_v43  ;;  %v2044_v39 = vmul.f32 %v2043_v48, %v2041_v11  ;;  %v2334_v27 = vadd.s32 536870912, %v2333_v2  ;;  %v2189_v26 = vshll.u32 %v3808_v61, %v2183_v21 }
 0x213   : > { %3008 = vst [vmem:[%s4440_s4 + $0x38] sm:$0xff] %v2168_v56  ;;  %v2193_v32 = vshrl.u32 %v3810_v1, %v2184_v10  ;;  %v2188_v4 = vor.u32 %v2187_v55, %v2186_v20  ;;  %v2192_v37 = vshll.u32 %v3809_v63, %v2183_v21  ;;  %v2195_v58 = vshll.u32 %v3810_v1, %v2183_v21 }
 0x214   : > { %v2196_v38 = vshrl.u32 %v3811_v5, %v2184_v10  ;;  %v2045_v35 = vxor.u32 2147483648, %v2044_v39  ;;  %v2335_v49 = vshrl.u32 %v2334_v27, 30  ;;  %v2191_v60 = vor.u32 %v2190_v25, %v2189_v26 }
 0x215   : > { %v2199_v44 = vshrl.u32 %v3812_v3, %v2184_v10  ;;  %v2198_v8 = vshll.u32 %v3811_v5, %v2183_v21  ;;  %v2177_v12 = vor.u32 8388608, %v2176_v14  ;;  %v2194_v17 = vor.u32 %v2193_v32, %v2192_v37 }
 0x216   : > { %v2197_v41 = vor.u32 %v2196_v38, %v2195_v58  ;;  %v2046_v42 = vsel %vm1963_vm0, %v2045_v35, %v2044_v39  ;;  %v2336_v34 = vshll.u32 %v2335_v49, 30  ;;  %v4931_v40 = vand.u32 3, %v2054_v50 }
 0x217   : > { %v2049_v31 = vsel %vm4859_vm2, %v4538_v59, %v2046_v42  ;;  %vm2275_vm14 = vcmp.lt.s32.totalorder %v4726_v54, 0  ;;  %v2200_v13 = vor.u32 %v2199_v44, %v2198_v8  ;;  %vm2201_vm12 = vcmp.lt.s32.totalorder %v4909_v23, 1 }
 0x218   : > { %3691 = vcosq.f32 %v2049_v31  ;;  %v4935_v52 = vsub.s32 %v2333_v2, %v2336_v34  ;;  %vm2204_vm15 = vcmp.lt.s32.totalorder %v4909_v23, 4  ;;  %v2209_v21 = vsel %vm2201_vm12, %v2188_v4, %v2191_v60 }
 0x219   : > { %3693 = vsinq.f32 %v2049_v31  ;;  %vm2203_vm0 = vcmp.lt.s32.totalorder %v4909_v23, 3  ;;  %v2210_v62 = vsel %vm2204_vm15, %v2197_v41, 920167782  ;;  %v2484_v14 = vand.u32 2139095040, %v4826_v30 }
 0x21a   : > { %vm4944_vm2 = vcmp.le.f32.partialorder %v2273_v18, 0.7853982  ;;  %v2339_v16 = vsub.s32 0, %v4935_v52  ;;  %vm2202_vm1 = vcmp.lt.s32.totalorder %v4909_v23, 2  ;;  %v2211_v33 = vsel %vm2203_vm0, %v2194_v17, %v2210_v62 }
 0x21b   : > { %v2217_v50 = vshll.u32 %v2177_v12, 8  ;;  %v2206_v22 = vsel %vm2204_vm15, %v2194_v17, 2102212464  ;;  %v2212_v43 = vsel %vm2202_vm1, %v2209_v21, %v2211_v33  ;;  %v2213_v11 = vsel %vm2201_vm12, %v2191_v60, %v2194_v17 }
 0x21c   : > { %v2214_v48 = vsel %vm2204_vm15, %v2200_v13, 1326507024  ;;  %v3165_v18 = vmin.u32 %v2339_v16, %v4935_v52  ;;  %v2359_v2 = vsub.s32 4, %v2335_v49  ;;  %v2185_v56 = vshrl.u32 %v3807_v57, %v2184_v10 }
 0x21d   : > { %v2215_v20 = vsel %vm2203_vm0, %v2197_v41, %v2214_v48  ;;  %v4962_v25 = vmul.u32.u64.low %v2217_v50, %v2212_v43  ;;  %v4963_v39 = vmul.u32.u64.high %v2217_v50, %v2212_v43, %v4962_v25  ;;  %v2485_v27 = vshrl.u32 %v2484_v14, 23 }
 0x21e   : > { %v2216_v55 = vsel %vm2202_vm1, %v2213_v11, %v2215_v20  ;;  %vm2056_vm3 = vcmp.lt.s32.totalorder %v4931_v40, 2  ;;  %v2341_v26 = vclz %v3165_v18  ;;  %v2205_v32 = vsel %vm2201_vm12, %v2185_v56, %v2188_v4 }
 0x21f   : > { %v2207_v37 = vsel %vm2203_vm0, %v2191_v60, %v2206_v22  ;;  %vm2053_vm4 = vweird.f32 %v4538_v59  ;;  %vm2057_vm5 = vcmp.eq.s32.totalorder %v4931_v40, 0  ;;  %v3172_v38 = vadd.s32 4294967169, %v2485_v27 }
 0x220   : > { %v4972_v10 = vmul.u32.u64.low %v2217_v50, %v2216_v55  ;;  %v4973_v58 = vmul.u32.u64.high %v2217_v50, %v2216_v55, %v4972_v10  ;;  %v3166_v35 = vadd.s32 4294967294, %v2341_v26  ;;  %v2360_v44 = vsel %vm2275_vm14, %v2359_v2, %v2335_v49 }
 0x221   : > { %v4979_v41 = vadd.f32 %v4419_v53, %v4540_v36  ;;  %v4983_v4 = vadd.f32 %v4532_v15, %v4635_v51  ;;  %v2208_v60 = vsel %vm2202_vm1, %v2205_v32, %v2207_v37  ;;  %v2227_v8 = vadd.s32 1, %v4963_v39 }
 0x222   : > { %v2491_v42 = vadd.s32 1, %v3172_v38  ;;  %v4990_v34 = vadd.f32 %v4615_v7, %v4694_v9  ;;  %v3692_v12 = vpop.eup %3691  ;;  %vm2060_vm6 = vcmp.eq.s32.totalorder %v4931_v40, 2  ;;  %v2329_v53 = vadd.s32 %v4889_v29, %v4886_v28 }
 0x223   : > { %vm3167_vm7 = vcmp.lt.s32.totalorder %v3166_v35, 0  ;;  %v2481_v15 = vand.u32 2147483647, %v4826_v30  ;;  %v3694_v36 = vpop.eup %3693  ;;  %v2061_v51 = vxor.u32 2147483648, %v3692_v12  ;;  %v2362_v49 = vsel %vm4944_vm2, 0, %v2360_v44 }
 0x224   : > { %v2344_v23 = vsel %vm3167_vm7, 0, %v3166_v35  ;;  %vm2226_vm8 = vc.u32 %v4973_v58, %v4962_v25  ;;  %v2058_v17 = vxor.u32 2147483648, %v3694_v36  ;;  %v2224_v31 = vmul.u32 %v2217_v50, %v2208_v60 }
 0x225   : > { %v2345_v7 = vsub.s32 32, %v2344_v23  ;;  %v2349_v9 = vsub.s32 4294967266, %v2344_v23  ;;  %v2062_v13 = vsel %vm2060_vm6, %v2061_v51, %v3694_v36  ;;  %v2346_v21 = vshll.u32 %v4935_v52, %v2344_v23 }
 0x226   : > { %v2228_v28 = vsel %vm2226_vm8, %v2227_v8, %v4963_v39  ;;  %vm2492_vm9 = vcmp.gt.s32.totalorder %v2491_v42, 0  ;;  %v2059_v29 = vsel %vm2057_vm5, %v3692_v12, %v2058_v17  ;;  %v2366_v22 = vadd.s32 3, %v2362_v49 }
 0x227   : > { %v2347_v62 = vshrl.u32 %v2329_v53, %v2345_v7  ;;  %v2350_v14 = vadd.s32 127, %v2349_v9  ;;  %v2229_v16 = vadd.s32 %v2228_v28, %v2224_v31  ;;  %v2063_v33 = vsel %vm2056_vm3, %v2059_v29, %v2062_v13 }
 0x228   : > { %v2488_v50 = vand.u32 8388607, %v2481_v15  ;;  %v2493_v43 = vsel %vm2492_vm9, %v2491_v42, 0  ;;  %v2064_v52 = vsel %vm2053_vm4, nan, %v2063_v33  ;;  %v2380_v56 = vand.u32 2139095040, %v4979_v41 }
 0x229   : > { %v2348_v11 = vor.u32 %v2347_v62, %v2346_v21  ;;  %v2351_v48 = vshll.u32 %v2350_v14, 23  ;;  %v2230_v18 = vadd.s32 536870912, %v2229_v16  ;;  %3007 = vst [vmem:[%s4440_s4 + $0x30] sm:$0xff] %v2064_v52  ;;  %v2495_v2 = vand.u32 31, %v2493_v43 }
 0x22a   : > { %v5011_v39 = vand.u32 3, %v2366_v22  ;;  %v2489_v40 = vor.u32 8388608, %v2488_v50  ;;  %v2377_v26 = vand.u32 2147483647, %v4979_v41  ;;  %vm2171_vm10 = vcmp.lt.s32.totalorder %v4730_v24, 0 }
 0x22b   : > { %v2352_v20 = vor.u32 4788187, %v2351_v48  ;;  %v2231_v55 = vshrl.u32 %v2230_v18, 30  ;;  %v2496_v27 = vsub.s32 32, %v2495_v2  ;;  %v2355_v37 = vcvt.s32.f32 %v2348_v11 }
 0x22c   : > { %v5016_v59 = vadd.s32 %v4962_v25, %v4973_v58  ;;  %v2381_v60 = vshrl.u32 %v2380_v56, 23  ;;  %v2498_v12 = vshll.u32 %v3807_v57, %v2495_v2  ;;  %v2494_v51 = vshrl.u32 %v2493_v43, 5 }
 0x22d   : > { %v2353_v32 = vand.u32 2147483647, %v2352_v20  ;;  %v2232_v10 = vshll.u32 %v2231_v55, 30  ;;  %v2499_v38 = vshrl.u32 %v3808_v61, %v2496_v27  ;;  %v2502_v35 = vshrl.u32 %v3809_v63, %v2496_v27 }
 0x22e   : > { %v2505_v44 = vshrl.u32 %v3810_v1, %v2496_v27  ;;  %v2508_v53 = vshrl.u32 %v3811_v5, %v2496_v27  ;;  %v2255_v36 = vsub.s32 4, %v2231_v55  ;;  %v2501_v25 = vshll.u32 %v3808_v61, %v2495_v2 }
 0x22f   : > { %v2356_v8 = vmul.f32 %v2355_v37, %v2353_v32  ;;  %v5021_v42 = vsub.s32 %v2229_v16, %v2232_v10  ;;  %v2504_v58 = vshll.u32 %v3809_v63, %v2495_v2  ;;  %v2500_v17 = vor.u32 %v2499_v38, %v2498_v12 }
 0x230   : > { %v2507_v7 = vshll.u32 %v3810_v1, %v2495_v2  ;;  %vm5031_vm13 = vcmp.le.f32.partialorder %v2169_v0, 0.7853982  ;;  %v2503_v31 = vor.u32 %v2502_v35, %v2501_v25  ;;  %v2510_v21 = vshll.u32 %v3811_v5, %v2495_v2 }
 0x231   : > { %v2357_v23 = vxor.u32 2147483648, %v2356_v8  ;;  %v2235_v49 = vsub.s32 0, %v5021_v42  ;;  %v2506_v13 = vor.u32 %v2505_v44, %v2504_v58  ;;  %v2511_v28 = vshrl.u32 %v3812_v3, %v2496_v27 }
 0x232   : > { %v2509_v14 = vor.u32 %v2508_v53, %v2507_v7  ;;  %v2529_v16 = vshll.u32 %v2489_v40, 8  ;;  %v2497_v33 = vshrl.u32 %v3807_v57, %v2496_v27  ;;  %v3168_v50 = vadd.s32 4294967169, %v2381_v60 }
 0x233   : > { %v2358_v29 = vsel %vm2275_vm14, %v2357_v23, %v2356_v8  ;;  %v3161_v62 = vmin.u32 %v2235_v49, %v5021_v42  ;;  %v2512_v22 = vor.u32 %v2511_v28, %v2510_v21  ;;  %vm2513_vm11 = vcmp.lt.s32.totalorder %v2494_v51, 1 }
 0x234   : > { %v2361_v0 = vsel %vm4944_vm2, %v4726_v54, %v2358_v29  ;;  %vm2516_vm12 = vcmp.lt.s32.totalorder %v2494_v51, 4  ;;  %v2256_v52 = vsel %vm2171_vm10, %v2255_v36, %v2231_v55  ;;  %v2521_v48 = vsel %vm2513_vm11, %v2500_v17, %v2503_v31 }
 0x235   : > { %3695 = vcosq.f32 %v2361_v0  ;;  %v2237_v43 = vclz %v3161_v62  ;;  %v2518_v11 = vsel %vm2516_vm12, %v2506_v13, 2102212464  ;;  %vm2515_vm14 = vcmp.lt.s32.totalorder %v2494_v51, 3 }
 0x236   : > { %3697 = vsinq.f32 %v2361_v0  ;;  %v2522_v2 = vsel %vm2516_vm12, %v2509_v14, 920167782  ;;  %v2525_v56 = vsel %vm2513_vm11, %v2503_v31, %v2506_v13  ;;  %vm2514_vm15 = vcmp.lt.s32.totalorder %v2494_v51, 2 }
 0x237   : > { %v3162_v18 = vadd.s32 4294967294, %v2237_v43  ;;  %v2517_v46 = vsel %vm2513_vm11, %v2497_v33, %v2500_v17  ;;  %v2523_v20 = vsel %vm2515_vm14, %v2506_v13, %v2522_v2  ;;  %v2526_v40 = vsel %vm2516_vm12, %v2512_v22, 1326507024 }
 0x238   : > { %v2519_v27 = vsel %vm2515_vm14, %v2503_v31, %v2518_v11  ;;  %v2524_v32 = vsel %vm2514_vm15, %v2521_v48, %v2523_v20  ;;  %v2527_v37 = vsel %vm2515_vm14, %v2509_v14, %v2526_v40  ;;  %v2258_v8 = vsel %vm5031_vm13, 0, %v2256_v52 }
 0x239   : > { %vm3163_vm0 = vcmp.lt.s32.totalorder %v3162_v18, 0  ;;  %v2528_v38 = vsel %vm2514_vm15, %v2525_v56, %v2527_v37  ;;  %v5048_v35 = vmul.u32.u64.low %v2529_v16, %v2524_v32  ;;  %v5049_v55 = vmul.u32.u64.high %v2529_v16, %v2524_v32, %v5048_v35 }
 0x23a   : > { %v2240_v10 = vsel %vm3163_vm0, 0, %v3162_v18  ;;  %v2387_v12 = vadd.s32 1, %v3168_v50  ;;  %vm2365_vm2 = vweird.f32 %v4726_v54  ;;  %v2520_v53 = vsel %vm2514_vm15, %v2517_v46, %v2519_v27 }
 0x23b   : > { %v2241_v44 = vsub.s32 32, %v2240_v10  ;;  %v2245_v60 = vsub.s32 4294967266, %v2240_v10  ;;  %v5056_v36 = vmul.u32.u64.low %v2529_v16, %v2528_v38  ;;  %v5057_v25 = vmul.u32.u64.high %v2529_v16, %v2528_v38, %v5056_v36 }
 0x23c   : > { %v2242_v58 = vshll.u32 %v5021_v42, %v2240_v10  ;;  %vm2388_vm1 = vcmp.gt.s32.totalorder %v2387_v12, 0  ;;  %vm2368_vm3 = vcmp.lt.s32.totalorder %v5011_v39, 2  ;;  %v2262_v17 = vadd.s32 3, %v2258_v8 }
 0x23d   : > { %v2243_v23 = vshrl.u32 %v5016_v59, %v2241_v44  ;;  %v2246_v49 = vadd.s32 127, %v2245_v60  ;;  %v2539_v7 = vadd.s32 1, %v5049_v55  ;;  %v2389_v31 = vsel %vm2388_vm1, %v2387_v12, 0 }
 0x23e   : > { %v2384_v51 = vand.u32 8388607, %v2377_v26  ;;  %v2391_v29 = vand.u32 31, %v2389_v31  ;;  %vm2369_vm4 = vcmp.eq.s32.totalorder %v5011_v39, 0  ;;  %v2536_v59 = vmul.u32 %v2529_v16, %v2520_v53 }
 0x23f   : > { %v3696_v13 = vpop.eup %3695  ;;  %v2244_v21 = vor.u32 %v2243_v23, %v2242_v58  ;;  %v2247_v28 = vshll.u32 %v2246_v49, 23  ;;  %vm2538_vm5 = vc.u32 %v5057_v25, %v5048_v35  ;;  %vm2372_vm6 = vcmp.eq.s32.totalorder %v5011_v39, 2 }
 0x240   : > { %v3698_v62 = vpop.eup %3697  ;;  %v2373_v42 = vxor.u32 2147483648, %v3696_v13  ;;  %v2540_v33 = vsel %vm2538_vm5, %v2539_v7, %v5049_v55  ;;  %v5070_v50 = vand.u32 3, %v2262_v17  ;;  %v2392_v52 = vsub.s32 32, %v2391_v29 }
 0x241   : > { %v2370_v14 = vxor.u32 2147483648, %v3698_v62  ;;  %v2248_v0 = vor.u32 4788187, %v2247_v28  ;;  %v2541_v43 = vadd.s32 %v2540_v33, %v2536_v59  ;;  %v2251_v18 = vcvt.s32.f32 %v2244_v21 }
 0x242   : > { %v2374_v22 = vsel %vm2372_vm6, %v2373_v42, %v3698_v62  ;;  %v2385_v2 = vor.u32 8388608, %v2384_v51  ;;  %v2395_v46 = vshrl.u32 %v3808_v61, %v2392_v52  ;;  %v2692_v20 = vand.u32 2139095040, %v4983_v4 }
 0x243   : > { %v2371_v11 = vsel %vm2369_vm4, %v3696_v13, %v2370_v14  ;;  %v2249_v48 = vand.u32 2147483647, %v2248_v0  ;;  %v2542_v56 = vadd.s32 536870912, %v2541_v43  ;;  %v2398_v32 = vshrl.u32 %v3809_v63, %v2392_v52 }
 0x244   : > { %v2375_v16 = vsel %vm2368_vm3, %v2371_v11, %v2374_v22  ;;  %v2401_v37 = vshrl.u32 %v3810_v1, %v2392_v52  ;;  %v2394_v38 = vshll.u32 %v3807_v57, %v2391_v29  ;;  %v2400_v39 = vshll.u32 %v3809_v63, %v2391_v29 }
 0x245   : > { %v2376_v40 = vsel %vm2365_vm2, nan, %v2375_v16  ;;  %v2252_v27 = vmul.f32 %v2251_v18, %v2249_v48  ;;  %v5081_v10 = vshrl.u32 %v2542_v56, 30  ;;  %v2404_v55 = vshrl.u32 %v3811_v5, %v2392_v52 }
 0x246   : > { %3010 = vst [vmem:[%s4440_s4 + $0x48] sm:$0xff] %v2376_v40  ;;  %v2390_v60 = vshrl.u32 %v2389_v31, 5  ;;  %v2397_v8 = vshll.u32 %v3808_v61, %v2391_v29  ;;  %v2403_v54 = vshll.u32 %v3810_v1, %v2391_v29  ;;  %v2396_v53 = vor.u32 %v2395_v46, %v2394_v38 }
 0x247   : > { %v2253_v44 = vxor.u32 2147483648, %v2252_v27  ;;  %v2544_v12 = vshll.u32 %v5081_v10, 30  ;;  %v2402_v36 = vor.u32 %v2401_v37, %v2400_v39  ;;  %v2407_v58 = vshrl.u32 %v3812_v3, %v2392_v52 }
 0x248   : > { %v2399_v49 = vor.u32 %v2398_v32, %v2397_v8  ;;  %v2405_v17 = vor.u32 %v2404_v55, %v2403_v54  ;;  %v2406_v7 = vshll.u32 %v3811_v5, %v2391_v29  ;;  %v2425_v21 = vshll.u32 %v2385_v2, 8 }
 0x249   : > { %v2254_v23 = vsel %vm2171_vm10, %v2253_v44, %v2252_v27  ;;  %v5096_v13 = vsub.s32 %v2541_v43, %v2544_v12  ;;  %v2693_v28 = vshrl.u32 %v2692_v20, 23  ;;  %v2393_v51 = vshrl.u32 %v3807_v57, %v2392_v52 }
 0x24a   : > { %v2257_v31 = vsel %vm5031_vm13, %v4730_v24, %v2254_v23  ;;  %v2408_v62 = vor.u32 %v2407_v58, %v2406_v7  ;;  %vm2412_vm7 = vcmp.lt.s32.totalorder %v2390_v60, 4  ;;  %vm2409_vm8 = vcmp.lt.s32.totalorder %v2390_v60, 1 }
 0x24b   : > { %3699 = vcosq.f32 %v2257_v31  ;;  %v2547_v42 = vsub.s32 0, %v5096_v13  ;;  %v2414_v59 = vsel %vm2412_vm7, %v2402_v36, 2102212464  ;;  %vm2410_vm9 = vcmp.lt.s32.totalorder %v2390_v60, 2 }
 0x24c   : > { %3701 = vsinq.f32 %v2257_v31  ;;  %vm2411_vm10 = vcmp.lt.s32.totalorder %v2390_v60, 3  ;;  %v2417_v29 = vsel %vm2409_vm8, %v2396_v53, %v2399_v49  ;;  %v2418_v14 = vsel %vm2412_vm7, %v2405_v17, 920167782 }
 0x24d   : > { %v3173_v9 = vmin.u32 %v2547_v42, %v5096_v13  ;;  %v2413_v0 = vsel %vm2409_vm8, %v2393_v51, %v2396_v53  ;;  %v2415_v33 = vsel %vm2411_vm10, %v2399_v49, %v2414_v59  ;;  %v2419_v22 = vsel %vm2411_vm10, %v2402_v36, %v2418_v14 }
 0x24e   : > { %v2420_v43 = vsel %vm2410_vm9, %v2417_v29, %v2419_v22  ;;  %v2421_v11 = vsel %vm2409_vm8, %v2399_v49, %v2402_v36  ;;  %v2422_v52 = vsel %vm2412_vm7, %v2408_v62, 1326507024  ;;  %v3180_v48 = vadd.s32 4294967169, %v2693_v28 }
 0x24f   : > { %v2549_v18 = vclz %v3173_v9  ;;  %v2423_v2 = vsel %vm2411_vm10, %v2405_v17, %v2422_v52  ;;  %v5102_v16 = vmul.u32.u64.low %v2425_v21, %v2420_v43  ;;  %v5103_v56 = vmul.u32.u64.high %v2425_v21, %v2420_v43, %v5102_v16 }
 0x250   : > { %vm2261_vm13 = vweird.f32 %v4730_v24  ;;  %vm2483_vm11 = vcmp.lt.s32.totalorder %v4826_v30, 0  ;;  %v2416_v20 = vsel %vm2410_vm9, %v2413_v0, %v2415_v33  ;;  %v2424_v40 = vsel %vm2410_vm9, %v2421_v11, %v2423_v2 }
 0x251   : > { %v3174_v46 = vadd.s32 4294967294, %v2549_v18  ;;  %v2699_v27 = vadd.s32 1, %v3180_v48  ;;  %vm2265_vm12 = vcmp.eq.s32.totalorder %v5070_v50, 0  ;;  %v2689_v38 = vand.u32 2147483647, %v4983_v4 }
 0x252   : > { %v5111_v32 = vmul.u32.u64.low %v2425_v21, %v2424_v40  ;;  %v5112_v37 = vmul.u32.u64.high %v2425_v21, %v2424_v40, %v5111_v32  ;;  %vm2268_vm14 = vcmp.eq.s32.totalorder %v5070_v50, 2  ;;  %v2537_v39 = vadd.s32 %v5048_v35, %v5057_v25 }
 0x253   : > { %vm3175_vm15 = vcmp.lt.s32.totalorder %v3174_v46, 0  ;;  %vm2700_vm0 = vcmp.gt.s32.totalorder %v2699_v27, 0  ;;  %v2567_v60 = vsub.s32 4, %v5081_v10  ;;  %v2432_v8 = vmul.u32 %v2425_v21, %v2416_v20 }
 0x254   : > { %v2552_v44 = vsel %vm3175_vm15, 0, %v3174_v46  ;;  %v2435_v54 = vadd.s32 1, %v5103_v56  ;;  %v2701_v23 = vsel %vm2700_vm0, %v2699_v27, 0  ;;  %vm2434_vm2 = vc.u32 %v5112_v37, %v5102_v16 }
 0x255   : > { %v3700_v55 = vpop.eup %3699  ;;  %v2553_v36 = vsub.s32 32, %v2552_v44  ;;  %v2557_v58 = vsub.s32 4294967266, %v2552_v44  ;;  %v2554_v17 = vshll.u32 %v5096_v13, %v2552_v44  ;;  %v2696_v35 = vand.u32 8388607, %v2689_v38 }
 0x256   : > { %v3702_v12 = vpop.eup %3701  ;;  %v2269_v53 = vxor.u32 2147483648, %v3700_v55  ;;  %v2436_v21 = vsel %vm2434_vm2, %v2435_v54, %v5103_v56  ;;  %vm2264_vm1 = vcmp.lt.s32.totalorder %v5070_v50, 2  ;;  %v2703_v51 = vand.u32 31, %v2701_v23 }
 0x257   : > { %v2266_v49 = vxor.u32 2147483648, %v3702_v12  ;;  %v2555_v7 = vshrl.u32 %v2537_v39, %v2553_v36  ;;  %v2558_v31 = vadd.s32 127, %v2557_v58  ;;  %v2437_v13 = vadd.s32 %v2436_v21, %v2432_v8 }
 0x258   : > { %v2270_v25 = vsel %vm2268_vm14, %v2269_v53, %v3702_v12  ;;  %vm5133_vm3 = vcmp.le.f32.partialorder %v2481_v15, 0.7853982  ;;  %v2568_v9 = vsel %vm2483_vm11, %v2567_v60, %v5081_v10  ;;  %v2704_v0 = vsub.s32 32, %v2703_v51 }
 0x259   : > { %v2267_v28 = vsel %vm2265_vm12, %v3700_v55, %v2266_v49  ;;  %v2556_v59 = vor.u32 %v2555_v7, %v2554_v17  ;;  %v2559_v29 = vshll.u32 %v2558_v31, 23  ;;  %v2438_v50 = vadd.s32 536870912, %v2437_v13 }
 0x25a   : > { %v2271_v62 = vsel %vm2264_vm1, %v2267_v28, %v2270_v25  ;;  %v2697_v43 = vor.u32 8388608, %v2696_v35  ;;  %v2706_v15 = vshll.u32 %v3807_v57, %v2703_v51  ;;  %v2707_v52 = vshrl.u32 %v3808_v61, %v2704_v0 }
 0x25b   : > { %v2272_v14 = vsel %vm2261_vm13, nan, %v2271_v62  ;;  %v2560_v33 = vor.u32 4788187, %v2559_v29  ;;  %v2563_v22 = vcvt.s32.f32 %v2556_v59  ;;  %v2439_v11 = vshrl.u32 %v2438_v50, 30 }
 0x25c   : > { %3009 = vst [vmem:[%s4440_s4 + $0x40] sm:$0xff] %v2272_v14  ;;  %v2709_v48 = vshll.u32 %v3808_v61, %v2703_v51  ;;  %v2710_v24 = vshrl.u32 %v3809_v63, %v2704_v0  ;;  %v2713_v2 = vshrl.u32 %v3810_v1, %v2704_v0  ;;  %v2715_v10 = vshll.u32 %v3810_v1, %v2703_v51 }
 0x25d   : > { %v2561_v18 = vand.u32 2147483647, %v2560_v33  ;;  %v2716_v56 = vshrl.u32 %v3811_v5, %v2704_v0  ;;  %v2570_v46 = vsel %vm5133_vm3, 0, %v2568_v9  ;;  %v2440_v20 = vshll.u32 %v2439_v11, 30 }
 0x25e   : > { %v2702_v40 = vshrl.u32 %v2701_v23, 5  ;;  %v2712_v27 = vshll.u32 %v3809_v63, %v2703_v51  ;;  %v2708_v39 = vor.u32 %v2707_v52, %v2706_v15  ;;  %v2711_v55 = vor.u32 %v2710_v24, %v2709_v48 }
 0x25f   : > { %v2564_v32 = vmul.f32 %v2563_v22, %v2561_v18  ;;  %v2717_v44 = vor.u32 %v2716_v56, %v2715_v10  ;;  %v5153_v60 = vsub.s32 %v2437_v13, %v2440_v20  ;;  %v2718_v54 = vshll.u32 %v3811_v5, %v2703_v51 }
 0x260   : > { %v2714_v8 = vor.u32 %v2713_v2, %v2712_v27  ;;  %v2719_v12 = vshrl.u32 %v3812_v3, %v2704_v0  ;;  %v2574_v36 = vadd.s32 3, %v2570_v46  ;;  %vm2379_vm4 = vcmp.lt.s32.totalorder %v4979_v41, 0 }
 0x261   : > { %v2565_v53 = vxor.u32 2147483648, %v2564_v32  ;;  %v2737_v58 = vshll.u32 %v2697_v43, 8  ;;  %v2588_v23 = vand.u32 2139095040, %v4990_v34  ;;  %v2443_v49 = vsub.s32 0, %v5153_v60 }
 0x262   : > { %v2720_v17 = vor.u32 %v2719_v12, %v2718_v54  ;;  %vm2721_vm5 = vcmp.lt.s32.totalorder %v2702_v40, 1  ;;  %vm2724_vm6 = vcmp.lt.s32.totalorder %v2702_v40, 4  ;;  %v2705_v25 = vshrl.u32 %v3807_v57, %v2704_v0 }
 0x263   : > { %v2566_v35 = vsel %vm2483_vm11, %v2565_v53, %v2564_v32  ;;  %vm2723_vm7 = vcmp.lt.s32.totalorder %v2702_v40, 3  ;;  %v2730_v7 = vsel %vm2724_vm6, %v2717_v44, 920167782  ;;  %v3169_v21 = vmin.u32 %v2443_v49, %v5153_v60 }
 0x264   : > { %v2569_v31 = vsel %vm5133_vm3, %v4826_v30, %v2566_v35  ;;  %v2726_v28 = vsel %vm2724_vm6, %v2714_v8, 2102212464  ;;  %v2729_v13 = vsel %vm2721_vm5, %v2708_v39, %v2711_v55  ;;  %v2731_v51 = vsel %vm2723_vm7, %v2714_v8, %v2730_v7 }
 0x265   : > { %3703 = vcosq.f32 %v2569_v31  ;;  %v2733_v62 = vsel %vm2721_vm5, %v2711_v55, %v2714_v8  ;;  %v2734_v59 = vsel %vm2724_vm6, %v2720_v17, 1326507024  ;;  %v2445_v29 = vclz %v3169_v21 }
 0x266   : > { %3705 = vsinq.f32 %v2569_v31  ;;  %v2463_v14 = vsub.s32 4, %v2439_v11  ;;  %vm2722_vm8 = vcmp.lt.s32.totalorder %v2702_v40, 2  ;;  %v2725_v9 = vsel %vm2721_vm5, %v2705_v25, %v2708_v39 }
 0x267   : > { %v2727_v42 = vsel %vm2723_vm7, %v2711_v55, %v2726_v28  ;;  %v2732_v50 = vsel %vm2722_vm8, %v2729_v13, %v2731_v51  ;;  %v2735_v0 = vsel %vm2723_vm7, %v2717_v44, %v2734_v59  ;;  %v3170_v33 = vadd.s32 4294967294, %v2445_v29 }
 0x268   : > { %v2736_v22 = vsel %vm2722_vm8, %v2733_v62, %v2735_v0  ;;  %v5173_v43 = vmul.u32.u64.low %v2737_v58, %v2732_v50  ;;  %v5174_v15 = vmul.u32.u64.high %v2737_v58, %v2732_v50, %v5173_v43  ;;  %vm5179_vm9 = vcmp.le.f32.partialorder %v2377_v26, 0.7853982 }
 0x269   : > { %v5183_v48 = vmul.u32.u64.low %v2737_v58, %v2736_v22  ;;  %v5184_v24 = vmul.u32.u64.high %v2737_v58, %v2736_v22, %v5183_v48  ;;  %v2589_v18 = vshrl.u32 %v2588_v23, 23  ;;  %vm3171_vm10 = vcmp.lt.s32.totalorder %v3170_v33, 0 }
 0x26a   : > { %v2464_v2 = vsel %vm2379_vm4, %v2463_v14, %v2439_v11  ;;  %v2728_v10 = vsel %vm2722_vm8, %v2725_v9, %v2727_v42  ;;  %v5190_v56 = vadd.f32 %v4692_v6, %v4805_v45  ;;  %v2575_v46 = vand.u32 3, %v2574_v36 }
 0x26b   : > { %v2448_v20 = vsel %vm3171_vm10, 0, %v3170_v33  ;;  %v3176_v40 = vadd.s32 4294967169, %v2589_v18  ;;  %v5194_v26 = vadd.f32 %v4790_v19, %v4882_v47  ;;  %v2433_v27 = vadd.s32 %v5102_v16, %v5112_v37 }
 0x26c   : > { %v2449_v32 = vsub.s32 32, %v2448_v20  ;;  %v2453_v39 = vsub.s32 4294967266, %v2448_v20  ;;  %v2747_v55 = vadd.s32 1, %v5174_v15  ;;  %v2466_v11 = vsel %vm5179_vm9, 0, %v2464_v2 }
 0x26d   : > { %v2744_v44 = vmul.u32 %v2737_v58, %v2728_v10  ;;  %vm2746_vm13 = vc.u32 %v5184_v24, %v5173_v43  ;;  %v2595_v6 = vadd.s32 1, %v3176_v40  ;;  %v2450_v45 = vshll.u32 %v5153_v60, %v2448_v20 }
 0x26e   : > { %v2451_v8 = vshrl.u32 %v2433_v27, %v2449_v32  ;;  %v2454_v19 = vadd.s32 127, %v2453_v39  ;;  %v2748_v47 = vsel %vm2746_vm13, %v2747_v55, %v5174_v15  ;;  %vm2580_vm11 = vcmp.eq.s32.totalorder %v2575_v46, 2 }
 0x26f   : > { %v3704_v54 = vpop.eup %3703  ;;  %v2749_v16 = vadd.s32 %v2748_v47, %v2744_v44  ;;  %v2585_v37 = vand.u32 2147483647, %v4990_v34  ;;  %vm2596_vm12 = vcmp.gt.s32.totalorder %v2595_v6, 0  ;;  %v2470_v17 = vadd.s32 3, %v2466_v11 }
 0x270   : > { %v3706_v12 = vpop.eup %3705  ;;  %v2581_v53 = vxor.u32 2147483648, %v3704_v54  ;;  %v2452_v36 = vor.u32 %v2451_v8, %v2450_v45  ;;  %v2455_v58 = vshll.u32 %v2454_v19, 23  ;;  %v2597_v23 = vsel %vm2596_vm12, %v2595_v6, 0 }
 0x271   : > { %v2578_v49 = vxor.u32 2147483648, %v3706_v12  ;;  %v2750_v35 = vadd.s32 536870912, %v2749_v16  ;;  %v2599_v25 = vand.u32 31, %v2597_v23  ;;  %vm2573_vm14 = vweird.f32 %v4826_v30 }
 0x272   : > { %vm2577_vm15 = vcmp.eq.s32.totalorder %v2575_v46, 0  ;;  %v2582_v60 = vsel %vm2580_vm11, %v2581_v53, %v3706_v12  ;;  %v2456_v7 = vor.u32 4788187, %v2455_v58  ;;  %vm2576_vm0 = vcmp.lt.s32.totalorder %v2575_v46, 2 }
 0x273   : > { %v2579_v31 = vsel %vm2577_vm15, %v3704_v54, %v2578_v49  ;;  %v5207_v21 = vshrl.u32 %v2750_v35, 30  ;;  %v2600_v28 = vsub.s32 32, %v2599_v25  ;;  %v2459_v62 = vcvt.s32.f32 %v2452_v36 }
 0x274   : > { %v2583_v13 = vsel %vm2576_vm0, %v2579_v31, %v2582_v60  ;;  %v2457_v51 = vand.u32 2147483647, %v2456_v7  ;;  %v2592_v59 = vand.u32 8388607, %v2585_v37  ;;  %v5211_v14 = vand.u32 3, %v2470_v17 }
 0x275   : > { %v2584_v29 = vsel %vm2573_vm14, nan, %v2583_v13  ;;  %v2752_v9 = vshll.u32 %v5207_v21, 30  ;;  %v2603_v42 = vshrl.u32 %v3808_v61, %v2600_v28  ;;  %v2606_v50 = vshrl.u32 %v3809_v63, %v2600_v28 }
 0x276   : > { %3012 = vst [vmem:[%s4440_s4 + $0x58] sm:$0xff] %v2584_v29  ;;  %v2460_v30 = vmul.f32 %v2459_v62, %v2457_v51  ;;  %v2609_v0 = vshrl.u32 %v3810_v1, %v2600_v28  ;;  %v2602_v22 = vshll.u32 %v3807_v57, %v2599_v25  ;;  %v2605_v15 = vshll.u32 %v3808_v61, %v2599_v25 }
 0x277   : > { %v5218_v33 = vsub.s32 %v2749_v16, %v2752_v9  ;;  %v2612_v48 = vshrl.u32 %v3811_v5, %v2600_v28  ;;  %v2593_v2 = vor.u32 8388608, %v2592_v59  ;;  %v2598_v10 = vshrl.u32 %v2597_v23, 5 }
 0x278   : > { %v2461_v18 = vxor.u32 2147483648, %v2460_v30  ;;  %v2608_v46 = vshll.u32 %v3809_v63, %v2599_v25  ;;  %v2604_v40 = vor.u32 %v2603_v42, %v2602_v22  ;;  %v2607_v27 = vor.u32 %v2606_v50, %v2605_v15 }
 0x279   : > { %v2755_v20 = vsub.s32 0, %v5218_v33  ;;  %v2611_v32 = vshll.u32 %v3810_v1, %v2599_v25  ;;  %vm2691_vm2 = vcmp.lt.s32.totalorder %v4983_v4, 0  ;;  %v2614_v11 = vshll.u32 %v3811_v5, %v2599_v25 }
 0x27a   : > { %v2462_v39 = vsel %vm2379_vm4, %v2461_v18, %v2460_v30  ;;  %v2610_v55 = vor.u32 %v2609_v0, %v2608_v46  ;;  %v2615_v44 = vshrl.u32 %v3812_v3, %v2600_v28  ;;  %v2745_v45 = vadd.s32 %v5173_v43, %v5184_v24 }
 0x27b   : > { %v2465_v6 = vsel %vm5179_vm9, %v4979_v41, %v2462_v39  ;;  %v3181_v8 = vmin.u32 %v2755_v20, %v5218_v33  ;;  %v2613_v19 = vor.u32 %v2612_v48, %v2611_v32  ;;  %v2775_v47 = vsub.s32 4, %v5207_v21 }
 0x27c   : > { %3707 = vcosq.f32 %v2465_v6  ;;  %v2616_v54 = vor.u32 %v2615_v44, %v2614_v11  ;;  %v2633_v16 = vshll.u32 %v2593_v2, 8  ;;  %vm5240_vm1 = vcmp.le.f32.partialorder %v2689_v38, 0.7853982 }
 0x27d   : > { %3709 = vsinq.f32 %v2465_v6  ;;  %v2757_v52 = vclz %v3181_v8  ;;  %vm2617_vm3 = vcmp.lt.s32.totalorder %v2598_v10, 1  ;;  %vm2620_vm4 = vcmp.lt.s32.totalorder %v2598_v10, 4 }
 0x27e   : > { %v2601_v43 = vshrl.u32 %v3807_v57, %v2600_v28  ;;  %vm2618_vm5 = vcmp.lt.s32.totalorder %v2598_v10, 2  ;;  %v2622_v24 = vsel %vm2620_vm4, %v2610_v55, 2102212464  ;;  %v2625_v53 = vsel %vm2617_vm3, %v2604_v40, %v2607_v27 }
 0x27f   : > { %v3182_v36 = vadd.s32 4294967294, %v2757_v52  ;;  %vm2619_vm6 = vcmp.lt.s32.totalorder %v2598_v10, 3  ;;  %v2626_v58 = vsel %vm2620_vm4, %v2613_v19, 920167782  ;;  %v2629_v23 = vsel %vm2617_vm3, %v2607_v27, %v2610_v55 }
 0x280   : > { %v2621_v49 = vsel %vm2617_vm3, %v2601_v43, %v2604_v40  ;;  %v2627_v17 = vsel %vm2619_vm6, %v2610_v55, %v2626_v58  ;;  %v2630_v35 = vsel %vm2620_vm4, %v2616_v54, 1326507024  ;;  %v2900_v38 = vand.u32 2139095040, %v5190_v56 }
 0x281   : > { %vm3183_vm7 = vcmp.lt.s32.totalorder %v3182_v36, 0  ;;  %v2623_v25 = vsel %vm2619_vm6, %v2607_v27, %v2622_v24  ;;  %v2628_v60 = vsel %vm2618_vm5, %v2625_v53, %v2627_v17  ;;  %v2631_v7 = vsel %vm2619_vm6, %v2613_v19, %v2630_v35 }
 0x282   : > { %v2760_v31 = vsel %vm3183_vm7, 0, %v3182_v36  ;;  %v2632_v28 = vsel %vm2618_vm5, %v2629_v23, %v2631_v7  ;;  %v5248_v13 = vmul.u32.u64.low %v2633_v16, %v2628_v60  ;;  %v5249_v51 = vmul.u32.u64.high %v2633_v16, %v2628_v60, %v5248_v13 }
 0x283   : > { %vm2469_vm8 = vweird.f32 %v4979_v41  ;;  %v2761_v62 = vsub.s32 32, %v2760_v31  ;;  %v2765_v59 = vsub.s32 4294967266, %v2760_v31  ;;  %v2776_v29 = vsel %vm2691_vm2, %v2775_v47, %v5207_v21 }
 0x284   : > { %v2901_v9 = vshrl.u32 %v2900_v38, 23  ;;  %vm2472_vm9 = vcmp.lt.s32.totalorder %v5211_v14, 2  ;;  %v2624_v30 = vsel %vm2618_vm5, %v2621_v49, %v2623_v25  ;;  %v2762_v0 = vshll.u32 %v5218_v33, %v2760_v31 }
 0x285   : > { %v5258_v42 = vmul.u32.u64.low %v2633_v16, %v2632_v28  ;;  %v5259_v50 = vmul.u32.u64.high %v2633_v16, %v2632_v28, %v5258_v42  ;;  %v2763_v22 = vshrl.u32 %v2745_v45, %v2761_v62  ;;  %v2766_v15 = vadd.s32 127, %v2765_v59 }
 0x286   : > { %v3188_v48 = vadd.s32 4294967169, %v2901_v9  ;;  %v3708_v18 = vpop.eup %3707  ;;  %vm2473_vm10 = vcmp.eq.s32.totalorder %v5211_v14, 0  ;;  %v2778_v2 = vsel %vm5240_vm1, 0, %v2776_v29  ;;  %v2643_v21 = vadd.s32 1, %v5249_v51 }
 0x287   : > { %v2897_v46 = vand.u32 2147483647, %v5190_v56  ;;  %v3710_v10 = vpop.eup %3709  ;;  %v2477_v20 = vxor.u32 2147483648, %v3708_v18  ;;  %v2764_v40 = vor.u32 %v2763_v22, %v2762_v0  ;;  %v2767_v27 = vshll.u32 %v2766_v15, 23 }
 0x288   : > { %v2907_v32 = vadd.s32 1, %v3188_v48  ;;  %v2474_v39 = vxor.u32 2147483648, %v3710_v10  ;;  %vm2476_vm13 = vcmp.eq.s32.totalorder %v5211_v14, 2  ;;  %v2640_v33 = vmul.u32 %v2633_v16, %v2624_v30 }
 0x289   : > { %vm2642_vm11 = vc.u32 %v5259_v50, %v5248_v13  ;;  %v2478_v55 = vsel %vm2476_vm13, %v2477_v20, %v3710_v10  ;;  %v2768_v11 = vor.u32 4788187, %v2767_v27  ;;  %v2782_v44 = vadd.s32 3, %v2778_v2 }
 0x28a   : > { %v2644_v6 = vsel %vm2642_vm11, %v2643_v21, %v5249_v51  ;;  %v2475_v45 = vsel %vm2473_vm10, %v3708_v18, %v2474_v39  ;;  %v2904_v19 = vand.u32 8388607, %v2897_v46  ;;  %vm2908_vm12 = vcmp.gt.s32.totalorder %v2907_v32, 0 }
 0x28b   : > { %v2645_v8 = vadd.s32 %v2644_v6, %v2640_v33  ;;  %v2479_v47 = vsel %vm2472_vm9, %v2475_v45, %v2478_v55  ;;  %v2769_v54 = vand.u32 2147483647, %v2768_v11  ;;  %v2771_v16 = vcvt.s32.f32 %v2764_v40 }
 0x28c   : > { %v2909_v52 = vsel %vm2908_vm12, %v2907_v32, 0  ;;  %v2480_v43 = vsel %vm2469_vm8, nan, %v2479_v47  ;;  %v5280_v58 = vand.u32 3, %v2782_v44  ;;  %v2905_v35 = vor.u32 8388608, %v2904_v19 }
 0x28d   : > { %v2646_v24 = vadd.s32 536870912, %v2645_v8  ;;  %v2911_v53 = vand.u32 31, %v2909_v52  ;;  %3011 = vst [vmem:[%s4440_s4 + $0x50] sm:$0xff] %v2480_v43  ;;  %v2772_v36 = vmul.f32 %v2771_v16, %v2769_v54  ;;  %v5284_v38 = vshrl.u32 %v2909_v52, 5 }
 0x28e   : > { %v2796_v14 = vand.u32 2139095040, %v5194_v26  ;;  %v2945_v10 = vshll.u32 %v2905_v35, 8  ;;  %vm2785_vm0 = vcmp.eq.s32.totalorder %v5280_v58, 0  ;;  %vm2781_vm4 = vweird.f32 %v4983_v4 }
 0x28f   : > { %v5282_v23 = vshrl.u32 %v2646_v24, 30  ;;  %v2912_v49 = vsub.s32 32, %v2911_v53  ;;  %v2773_v17 = vxor.u32 2147483648, %v2772_v36  ;;  %v2914_v41 = vshll.u32 %v3807_v57, %v2911_v53 }
 0x290   : > { %v2917_v7 = vshll.u32 %v3808_v61, %v2911_v53  ;;  %v2920_v9 = vshll.u32 %v3809_v63, %v2911_v53  ;;  %v2923_v30 = vshll.u32 %v3810_v1, %v2911_v53  ;;  %v2797_v22 = vshrl.u32 %v2796_v14, 23 }
 0x291   : > { %v2648_v25 = vshll.u32 %v5282_v23, 30  ;;  %v2915_v60 = vshrl.u32 %v3808_v61, %v2912_v49  ;;  %v2774_v31 = vsel %vm2691_vm2, %v2773_v17, %v2772_v36  ;;  %v2918_v28 = vshrl.u32 %v3809_v63, %v2912_v49 }
 0x292   : > { %v2921_v51 = vshrl.u32 %v3810_v1, %v2912_v49  ;;  %v2924_v62 = vshrl.u32 %v3811_v5, %v2912_v49  ;;  %v2777_v59 = vsel %vm5240_vm1, %v4983_v4, %v2774_v31  ;;  %v2926_v2 = vshll.u32 %v3811_v5, %v2911_v53 }
 0x293   : > { %v5299_v29 = vsub.s32 %v2645_v8, %v2648_v25  ;;  %3711 = vcosq.f32 %v2777_v59  ;;  %v2916_v42 = vor.u32 %v2915_v60, %v2914_v41  ;;  %v2919_v0 = vor.u32 %v2918_v28, %v2917_v7 }
 0x294   : > { %3713 = vsinq.f32 %v2777_v59  ;;  %v2922_v48 = vor.u32 %v2921_v51, %v2920_v9  ;;  %v2925_v18 = vor.u32 %v2924_v62, %v2923_v30  ;;  %v2927_v12 = vshrl.u32 %v3812_v3, %v2912_v49 }
 0x295   : > { %v2651_v15 = vsub.s32 0, %v5299_v29  ;;  %vm2929_vm14 = vcmp.lt.s32.totalorder %v5284_v38, 1  ;;  %vm2932_vm15 = vcmp.lt.s32.totalorder %v5284_v38, 4  ;;  %v3184_v32 = vadd.s32 4294967169, %v2797_v22 }
 0x296   : > { %v2928_v20 = vor.u32 %v2927_v12, %v2926_v2  ;;  %v2937_v40 = vsel %vm2929_vm14, %v2916_v42, %v2919_v0  ;;  %v2938_v27 = vsel %vm2932_vm15, %v2925_v18, 920167782  ;;  %v2913_v33 = vshrl.u32 %v3807_v57, %v2912_v49 }
 0x297   : > { %v3177_v21 = vmin.u32 %v2651_v15, %v5299_v29  ;;  %vm2931_vm2 = vcmp.lt.s32.totalorder %v5284_v38, 3  ;;  %v2934_v55 = vsel %vm2932_vm15, %v2922_v48, 2102212464  ;;  %vm2784_vm1 = vcmp.lt.s32.totalorder %v5280_v58, 2 }
 0x298   : > { %vm2930_vm3 = vcmp.lt.s32.totalorder %v5284_v38, 2  ;;  %v2939_v11 = vsel %vm2931_vm2, %v2922_v48, %v2938_v27  ;;  %v2941_v44 = vsel %vm2929_vm14, %v2919_v0, %v2922_v48  ;;  %v2942_v6 = vsel %vm2932_vm15, %v2928_v20, 1326507024 }
 0x299   : > { %v2653_v39 = vclz %v3177_v21  ;;  %v2933_v8 = vsel %vm2929_vm14, %v2913_v33, %v2916_v42  ;;  %v2940_v19 = vsel %vm2930_vm3, %v2937_v40, %v2939_v11  ;;  %v2943_v47 = vsel %vm2931_vm2, %v2925_v18, %v2942_v6 }
 0x29a   : > { %v2935_v54 = vsel %vm2931_vm2, %v2919_v0, %v2934_v55  ;;  %v2944_v16 = vsel %vm2930_vm3, %v2941_v44, %v2943_v47  ;;  %v5325_v52 = vmul.u32.u64.low %v2945_v10, %v2940_v19  ;;  %v5326_v43 = vmul.u32.u64.high %v2945_v10, %v2940_v19, %v5325_v52 }
 0x29b   : > { %v3178_v45 = vadd.s32 4294967294, %v2653_v39  ;;  %vm2788_vm5 = vcmp.eq.s32.totalorder %v5280_v58, 2  ;;  %v5330_v24 = vmul.u32.u64.low %v2945_v10, %v2944_v16  ;;  %v5331_v53 = vmul.u32.u64.high %v2945_v10, %v2944_v16, %v5330_v24 }
 0x29c   : > { %v2641_v49 = vadd.s32 %v5248_v13, %v5259_v50  ;;  %v2793_v35 = vand.u32 2147483647, %v5194_v26  ;;  %v2803_v14 = vadd.s32 1, %v3184_v32  ;;  %v2936_v31 = vsel %vm2930_vm3, %v2933_v8, %v2935_v54 }
 0x29d   : > { %vm3179_vm6 = vcmp.lt.s32.totalorder %v3178_v45, 0  ;;  %v3712_v36 = vpop.eup %3711  ;;  %v2671_v51 = vsub.s32 4, %v5282_v23  ;;  %v2955_v62 = vadd.s32 1, %v5326_v43  ;;  %v2952_v42 = vmul.u32 %v2945_v10, %v2936_v31 }
 0x29e   : > { %v2656_v17 = vsel %vm3179_vm6, 0, %v3178_v45  ;;  %v3714_v25 = vpop.eup %3713  ;;  %v2789_v41 = vxor.u32 2147483648, %v3712_v36  ;;  %vm2804_vm7 = vcmp.gt.s32.totalorder %v2803_v14, 0  ;;  %vm2954_vm8 = vc.u32 %v5331_v53, %v5325_v52 }
 0x29f   : > { %v2657_v60 = vsub.s32 32, %v2656_v17  ;;  %v2661_v7 = vsub.s32 4294967266, %v2656_v17  ;;  %v2786_v28 = vxor.u32 2147483648, %v3714_v25  ;;  %v2658_v50 = vshll.u32 %v5299_v29, %v2656_v17 }
 0x2a0   : > { %v2790_v13 = vsel %vm2788_vm5, %v2789_v41, %v3714_v25  ;;  %v2805_v38 = vsel %vm2804_vm7, %v2803_v14, 0  ;;  %v2956_v48 = vsel %vm2954_vm8, %v2955_v62, %v5326_v43  ;;  %vm2587_vm9 = vcmp.lt.s32.totalorder %v4990_v34, 0 }
 0x2a1   : > { %v2659_v59 = vshrl.u32 %v2641_v49, %v2657_v60  ;;  %v2662_v9 = vadd.s32 127, %v2661_v7  ;;  %v2787_v30 = vsel %vm2785_vm0, %v3712_v36, %v2786_v28  ;;  %v2957_v18 = vadd.s32 %v2956_v48, %v2952_v42 }
 0x2a2   : > { %v2791_v0 = vsel %vm2784_vm1, %v2787_v30, %v2790_v13  ;;  %v2807_v2 = vand.u32 31, %v2805_v38  ;;  %v2800_v10 = vand.u32 8388607, %v2793_v35  ;;  %v2672_v27 = vsel %vm2587_vm9, %v2671_v51, %v5282_v23 }
 0x2a3   : > { %v2660_v22 = vor.u32 %v2659_v59, %v2658_v50  ;;  %v2663_v15 = vshll.u32 %v2662_v9, 23  ;;  %v2792_v29 = vsel %vm2781_vm4, nan, %v2791_v0  ;;  %v2958_v21 = vadd.s32 536870912, %v2957_v18 }
 0x2a4   : > { %3014 = vst [vmem:[%s4440_s4 + $0x68] sm:$0xff] %v2792_v29  ;;  %v2808_v20 = vsub.s32 32, %v2807_v2  ;;  %v2806_v32 = vshrl.u32 %v2805_v38, 5  ;;  %v2819_v55 = vshll.u32 %v3810_v1, %v2807_v2  ;;  %v2810_v23 = vshll.u32 %v3807_v57, %v2807_v2 }
 0x2a5   : > { %v2664_v12 = vor.u32 4788187, %v2663_v15  ;;  %v2667_v40 = vcvt.s32.f32 %v2660_v22  ;;  %v5359_v4 = vshrl.u32 %v2958_v21, 30  ;;  %v2813_v19 = vshll.u32 %v3808_v61, %v2807_v2 }
 0x2a6   : > { %v2811_v39 = vshrl.u32 %v3808_v61, %v2808_v20  ;;  %v2814_v33 = vshrl.u32 %v3809_v63, %v2808_v20  ;;  %v2817_v44 = vshrl.u32 %v3810_v1, %v2808_v20  ;;  %v2820_v6 = vshrl.u32 %v3811_v5, %v2808_v20 }
 0x2a7   : > { %v2665_v58 = vand.u32 2147483647, %v2664_v12  ;;  %v2823_v45 = vshrl.u32 %v3812_v3, %v2808_v20  ;;  %v2960_v8 = vshll.u32 %v5359_v4, 30  ;;  %v2816_v47 = vshll.u32 %v3809_v63, %v2807_v2 }
 0x2a8   : > { %vm5373_vm10 = vcmp.le.f32.partialorder %v2585_v37, 0.7853982  ;;  %v2821_v1 = vor.u32 %v2820_v6, %v2819_v55  ;;  %v2822_v43 = vshll.u32 %v3811_v5, %v2807_v2  ;;  %v2812_v3 = vor.u32 %v2811_v39, %v2810_v23 }
 0x2a9   : > { %v2668_v11 = vmul.f32 %v2667_v40, %v2665_v58  ;;  %v2961_v24 = vsub.s32 %v2957_v18, %v2960_v8  ;;  %v2815_v36 = vor.u32 %v2814_v33, %v2813_v19  ;;  %v2818_v49 = vor.u32 %v2817_v44, %v2816_v47 }
 0x2aa   : > { %v2674_v61 = vsel %vm5373_vm10, 0, %v2672_v27  ;;  %v2824_v63 = vor.u32 %v2823_v45, %v2822_v43  ;;  %v2801_v25 = vor.u32 8388608, %v2800_v10  ;;  %vm2828_vm13 = vcmp.lt.s32.totalorder %v2806_v32, 4 }
 0x2ab   : > { %v2669_v16 = vxor.u32 2147483648, %v2668_v11  ;;  %v2963_v14 = vsub.s32 0, %v2961_v24  ;;  %vm2825_vm11 = vcmp.lt.s32.totalorder %v2806_v32, 1  ;;  %vm2827_vm12 = vcmp.lt.s32.totalorder %v2806_v32, 3 }
 0x2ac   : > { %v2834_v5 = vsel %vm2828_vm13, %v2821_v1, 920167782  ;;  %v2830_v60 = vsel %vm2828_vm13, %v2818_v49, 2102212464  ;;  %v2833_v7 = vsel %vm2825_vm11, %v2812_v3, %v2815_v36  ;;  %v2809_v31 = vshrl.u32 %v3807_v57, %v2808_v20 }
 0x2ad   : > { %v2670_v17 = vsel %vm2587_vm9, %v2669_v16, %v2668_v11  ;;  %v3189_v41 = vmin.u32 %v2963_v14, %v2961_v24  ;;  %v2835_v28 = vsel %vm2827_vm12, %v2818_v49, %v2834_v5  ;;  %v2837_v51 = vsel %vm2825_vm11, %v2815_v36, %v2818_v49 }
 0x2ae   : > { %v2673_v37 = vsel %vm5373_vm10, %v4990_v34, %v2670_v17  ;;  %v2838_v62 = vsel %vm2828_vm13, %v2824_v63, 1326507024  ;;  %v2678_v13 = vadd.s32 3, %v2674_v61  ;;  %vm2826_vm14 = vcmp.lt.s32.totalorder %v2806_v32, 2 }
 0x2af   : > { %3715 = vcosq.f32 %v2673_v37  ;;  %v2965_v50 = vclz %v3189_v41  ;;  %v2841_v59 = vshll.u32 %v2801_v25, 8  ;;  %v2829_v9 = vsel %vm2825_vm11, %v2809_v31, %v2812_v3 }
 0x2b0   : > { %3717 = vsinq.f32 %v2673_v37  ;;  %v2831_v30 = vsel %vm2827_vm12, %v2815_v36, %v2830_v60  ;;  %v2836_v42 = vsel %vm2826_vm14, %v2833_v7, %v2835_v28  ;;  %v2839_v38 = vsel %vm2827_vm12, %v2821_v1, %v2838_v62 }
 0x2b1   : > { %v3190_v0 = vadd.s32 4294967294, %v2965_v50  ;;  %v2840_v22 = vsel %vm2826_vm14, %v2837_v51, %v2839_v38  ;;  %v5389_v15 = vmul.u32.u64.low %v2841_v59, %v2836_v42  ;;  %v5390_v48 = vmul.u32.u64.high %v2841_v59, %v2836_v42, %v5389_v15 }
 0x2b2   : > { %v5392_v57 = vmul.u32.u64.low %v2841_v59, %v2840_v22  ;;  %v5393_v29 = vmul.u32.u64.high %v2841_v59, %v2840_v22, %v5392_v57  ;;  %v2832_v18 = vsel %vm2826_vm14, %v2829_v9, %v2831_v30  ;;  %v2679_v2 = vand.u32 3, %v2678_v13 }
 0x2b3   : > { %vm3191_vm15 = vcmp.lt.s32.totalorder %v3190_v0, 0  ;;  %v2953_v21 = vadd.s32 %v5325_v52, %v5331_v53  ;;  %v2851_v58 = vadd.s32 1, %v5390_v48  ;;  %v2848_v32 = vmul.u32 %v2841_v59, %v2832_v18 }
 0x2b4   : > { %v2968_v12 = vsel %vm3191_vm15, 0, %v3190_v0  ;;  %vm2850_vm0 = vc.u32 %v5393_v29, %v5389_v15  ;;  %vm2684_vm2 = vcmp.eq.s32.totalorder %v2679_v2, 2  ;;  %vm2681_vm1 = vcmp.eq.s32.totalorder %v2679_v2, 0 }
 0x2b5   : > { %v2969_v10 = vsub.s32 32, %v2968_v12  ;;  %v2973_v20 = vsub.s32 4294967266, %v2968_v12  ;;  %v2970_v27 = vshll.u32 %v2961_v24, %v2968_v12  ;;  %v2852_v44 = vsel %vm2850_vm0, %v2851_v58, %v5390_v48 }
 0x2b6   : > { %v2853_v45 = vadd.s32 %v2852_v44, %v2848_v32  ;;  %vm2680_vm3 = vcmp.lt.s32.totalorder %v2679_v2, 2  ;;  %vm2677_vm4 = vweird.f32 %v4990_v34  ;;  %v2983_v49 = vsub.s32 4, %v5359_v4 }
 0x2b7   : > { %v2971_v55 = vshrl.u32 %v2953_v21, %v2969_v10  ;;  %v2974_v11 = vadd.s32 127, %v2973_v20  ;;  %vm2899_vm5 = vcmp.lt.s32.totalorder %v5190_v56, 0  ;;  %vm2898_vm6 = vcmp.le.f32.partialorder %v2897_v46, 0.7853982 }
 0x2b8   : > { %v2854_v19 = vadd.s32 536870912, %v2853_v45  ;;  %v2984_v37 = vsel %vm2899_vm5, %v2983_v49, %v5359_v4  ;;  %v2849_v28 = vadd.s32 %v5389_v15, %v5393_v29  ;;  %vm2989_vm13 = vweird.f32 %v5190_v56 }
 0x2b9   : > { %v3716_v40 = vpop.eup %3715  ;;  %v2972_v53 = vor.u32 %v2971_v55, %v2970_v27  ;;  %v2975_v8 = vshll.u32 %v2974_v11, 23  ;;  %v2986_v5 = vsel %vm2898_vm6, 0, %v2984_v37  ;;  %vm2795_vm11 = vcmp.lt.s32.totalorder %v5194_v26, 0 }
 0x2ba   : > { %v3718_v39 = vpop.eup %3717  ;;  %v2685_v33 = vxor.u32 2147483648, %v3716_v40  ;;  %v2855_v1 = vshrl.u32 %v2854_v19, 30  ;;  %v2990_v7 = vadd.s32 3, %v2986_v5  ;;  %vm2794_vm12 = vcmp.le.f32.partialorder %v2793_v35, 0.7853982 }
 0x2bb   : > { %v2682_v6 = vxor.u32 2147483648, %v3718_v39  ;;  %v2976_v54 = vor.u32 4788187, %v2975_v8  ;;  %v2979_v24 = vcvt.s32.f32 %v2972_v53 }
 0x2bc   : > { %v2686_v52 = vsel %vm2684_vm2, %v2685_v33, %v3718_v39  ;;  %v2856_v3 = vshll.u32 %v2855_v1, 30  ;;  %v2991_v13 = vand.u32 3, %v2990_v7  ;;  %v2879_v21 = vsub.s32 4, %v2855_v1 }
 0x2bd   : > { %v2683_v23 = vsel %vm2681_vm1, %v3716_v40, %v2682_v6  ;;  %v2977_v43 = vand.u32 2147483647, %v2976_v54  ;;  %vm2885_vm2 = vweird.f32 %v5194_v26 }
 0x2be   : > { %v2687_v47 = vsel %vm2680_vm3, %v2683_v23, %v2686_v52  ;;  %v2857_v17 = vsub.s32 %v2853_v45, %v2856_v3  ;;  %vm2996_vm8 = vcmp.eq.s32.totalorder %v2991_v13, 2  ;;  %vm2993_vm9 = vcmp.eq.s32.totalorder %v2991_v13, 0 }
 0x2bf   : > { %v2688_v16 = vsel %vm2677_vm4, nan, %v2687_v47  ;;  %v2980_v36 = vmul.f32 %v2979_v24, %v2977_v43  ;;  %vm2992_vm10 = vcmp.lt.s32.totalorder %v2991_v13, 2  ;;  %v2880_v58 = vsel %vm2795_vm11, %v2879_v21, %v2855_v1 }
 0x2c0   : > { %3013 = vst [vmem:[%s4440_s4 + $0x60] sm:$0xff] %v2688_v16  ;;  %v2859_v63 = vsub.s32 0, %v2857_v17 }
 0x2c1   : > { %v2981_v61 = vxor.u32 2147483648, %v2980_v36 }
 0x2c2   : > { %v3185_v25 = vmin.u32 %v2859_v63, %v2857_v17 }
 0x2c3   : > { %v2982_v34 = vsel %vm2899_vm5, %v2981_v61, %v2980_v36 }
 0x2c4   : > { %v2985_v14 = vsel %vm2898_vm6, %v5190_v56, %v2982_v34  ;;  %v2861_v41 = vclz %v3185_v25  ;;  %v2882_v56 = vsel %vm2794_vm12, 0, %v2880_v58 }
 0x2c5   : > { %3719 = vcosq.f32 %v2985_v14  ;;  %v2886_v27 = vadd.s32 3, %v2882_v56 }
 0x2c6   : > { %3721 = vsinq.f32 %v2985_v14  ;;  %v3186_v60 = vadd.s32 4294967294, %v2861_v41 }
 0x2c7   : > { %v2887_v32 = vand.u32 3, %v2886_v27 }
 0x2c8   : > { %vm3187_vm7 = vcmp.lt.s32.totalorder %v3186_v60, 0 }
 0x2c9   : > { %v2864_v31 = vsel %vm3187_vm7, 0, %v3186_v60  ;;  %vm2892_vm14 = vcmp.eq.s32.totalorder %v2887_v32, 2  ;;  %vm2889_vm15 = vcmp.eq.s32.totalorder %v2887_v32, 0  ;;  %vm2888_vm0 = vcmp.lt.s32.totalorder %v2887_v32, 2 }
 0x2ca   : > { %v2865_v51 = vsub.s32 32, %v2864_v31  ;;  %v2869_v62 = vsub.s32 4294967266, %v2864_v31  ;;  %v2866_v46 = vshll.u32 %v2857_v17, %v2864_v31 }
 0x2cc   : > { %v2867_v50 = vshrl.u32 %v2849_v28, %v2865_v51  ;;  %v2870_v59 = vadd.s32 127, %v2869_v62 }
 0x2ce   : > { %v2868_v42 = vor.u32 %v2867_v50, %v2866_v46  ;;  %v2871_v38 = vshll.u32 %v2870_v59, 23 }
 0x2cf   : > { %v3720_v4 = vpop.eup %3719 }
 0x2d0   : > { %v3722_v9 = vpop.eup %3721  ;;  %v2997_v30 = vxor.u32 2147483648, %v3720_v4  ;;  %v2872_v48 = vor.u32 4788187, %v2871_v38  ;;  %v2875_v18 = vcvt.s32.f32 %v2868_v42 }
 0x2d1   : > { %v2994_v0 = vxor.u32 2147483648, %v3722_v9 }
 0x2d2   : > { %v2998_v22 = vsel %vm2996_vm8, %v2997_v30, %v3722_v9  ;;  %v2873_v29 = vand.u32 2147483647, %v2872_v48 }
 0x2d3   : > { %v2995_v57 = vsel %vm2993_vm9, %v3720_v4, %v2994_v0 }
 0x2d4   : > { %v2999_v15 = vsel %vm2992_vm10, %v2995_v57, %v2998_v22  ;;  %v2876_v12 = vmul.f32 %v2875_v18, %v2873_v29 }
 0x2d5   : > { %v3000_v2 = vsel %vm2989_vm13, nan, %v2999_v15 }
 0x2d6   : > { %3016 = vst [vmem:[%s4440_s4 + $0x78] sm:$0xff] %v3000_v2  ;;  %v2877_v10 = vxor.u32 2147483648, %v2876_v12 }
 0x2d8   : > { %v2878_v20 = vsel %vm2795_vm11, %v2877_v10, %v2876_v12 }
 0x2d9   : > { %v2881_v40 = vsel %vm2794_vm12, %v5194_v26, %v2878_v20 }
 0x2da   : > { %3723 = vcosq.f32 %v2881_v40 }
 0x2db   : > { %3725 = vsinq.f32 %v2881_v40 }
 0x2e4   : > { %v3724_v39 = vpop.eup %3723 }
 0x2e5   : > { %v3726_v33 = vpop.eup %3725  ;;  %v2893_v55 = vxor.u32 2147483648, %v3724_v39 }
 0x2e6   : > { %v2890_v11 = vxor.u32 2147483648, %v3726_v33 }
 0x2e7   : > { %v2894_v35 = vsel %vm2892_vm14, %v2893_v55, %v3726_v33 }
 0x2e8   : > { %v2891_v44 = vsel %vm2889_vm15, %v3724_v39, %v2890_v11 }
 0x2e9   : > { %v2895_v6 = vsel %vm2888_vm0, %v2891_v44, %v2894_v35 }
 0x2ea   : > { %v2896_v45 = vsel %vm2885_vm2, nan, %v2895_v6 }
 0x2eb   : > { %3015 = vst [vmem:[%s4440_s4 + $0x70] sm:$0xff] %v2896_v45 }
 0x2ec   : > { %3740 = shalt.err (!%p3737_p5)
}
 0x2ed   : > { %s3741_s24 = scalar_lea.hbm %s5420_s15, 2048  ;;  %s3745_s27 = scalar_lea.hbm %s5476_s2, 4096 }
 0x2ee   : > { %p3742_p6 = scmp.ne.s32.totalorder %s5420_s15, %s3741_s24  ;;  %p3746_p10 = scmp.lt.u32.totalorder %s5420_s15, %s5476_s2 }
 0x2ef   : > { %p3747_p11 = scmp.lt.u32.totalorder %s3745_s27, %s3741_s24  ;;  %p3749_p13 = scmp.lt.u32.totalorder %s3741_s24, %s5420_s15 }
 0x2f0   : > { %p3743_p7 = pnand %p3742_p6, %p3871_p4 }
 0x2f1   : > { %p3748_p12 = por %p3747_p11, %p3746_p10 }
 0x2f2   : > { %p3744_p9 = pneg %p3743_p7 }
 0x2f3   : > { %p3750_p0 = por %p3749_p13, %p3748_p12 }
 0x2f5   : > { %p3751_p1 = pnand %p3750_p0, %p3744_p9 }
 0x2f7   : > { %3754 = shalt.err (!%p3751_p1)
}
 0x2f8   : > { %s3814_s30 = smov 128   ;;  %s3815_s3 = smov 8  }
 0x2f9   : > { %3600 = dma.vmem_to_hbm [thread:$0]  (%p3871_p4), %s5422_s6, 2048, %s5420_s15, %s5428_s12, %s3814_s30, %s3814_s30, %s3815_s3  }
 0x2fa PF: > { %p3606_p2 = scmp.ge.s32.totalorder %s3805_s14, 2  ;;  %s3047_s4 = sand.u32 1, %s3785_s9  }
 0x2fb   : > { %s3048_s5 = scalar_lea.sflag [#allocation3], %s3047_s4 }
 0x2fc   : > { %p3603_p3 = pnand %p3606_p2, %p3878_p8 }
 0x2fe   : > { %3780 = dma.done.wait (!%p3603_p3), %s3048_s5, 2048  }
 0x2ff   : > { %3782 = vsyncadd (!%p3603_p3), %s3048_s5, 4294965248  ;;  %s15_s14 = sadd.s32 1, %s3805_s14   ;;  %s5507_s9 = smov %s3789_s10 }
 0x300   : > { %p12_p5 = scmp.ge.s32.totalorder %s15_s14, 4   ;;  %s5508_s10 = smov %s3793_s11 }
 0x301   : > { %s5509_s11 = smov %s3884_s22  ;;  %s5510_s12 = smov %s3801_s13 }
 0x302   : > { %s5511_s13 = smov %s5513_s17  ;;  %14 = sbr.rel (!%p12_p5) target bundleno = 4 (0x4), region = 66 }
 0x309   :  { %3053 = vsyncpa [#allocation3], 1 }
 0x30a   :  { %3055 = vsyncpa [#allocation3 + $0x1], 1 }

</bundles_post_ra>
